<compile_context>
chip_gen: v6e
topology: v6e:2x2x1
jax: 0.10.0
libtpu: 0.0.40
codegen_flags: <defaults>
</compile_context>

<pallas_src>
import math

import jax
import jax.numpy as jnp
from jax.experimental import pallas as pl
from jax.experimental.pallas import tpu as pltpu


def _round_up(x, m):
    return ((x + m - 1) // m) * m


def _mlp_kernel(x_ref, w1_ref, b1_ref, w2_ref, b2_ref, w3_ref, b3_ref, o_ref):
    # x arrives as f32 (no wrapper-side pad/cast pass over it); cast to bf16 on
    # the VPU right before feeding the MXU.
    x = x_ref[...].astype(jnp.bfloat16)
    # Layer 1: bf16 MXU matmul, f32 accumulate; bias + ReLU in f32.
    h1 = jnp.dot(x, w1_ref[...], preferred_element_type=jnp.float32)
    h1 = jnp.maximum(h1 + b1_ref[...], 0.0)
    # Layer 2: bf16 MXU matmul, f32 accumulate.
    h2 = jnp.dot(h1.astype(jnp.bfloat16), w2_ref[...],
                 preferred_element_type=jnp.float32)
    h2 = jnp.maximum(h2 + b2_ref[...], 0.0)
    # Layer 3 (out_features == 1): VPU multiply + lane reduction instead of an
    # N=1 MXU matmul; w3 is a lane-major f32 row, b3 an SMEM scalar.  Store the
    # (TB, 1) column directly: 4 B/row of output HBM traffic.
    o = jnp.sum(h2 * w3_ref[...], axis=-1, keepdims=True) + b3_ref[0, 0]
    o_ref[...] = o.astype(o_ref.dtype)


def _vmem_budget_bytes():
    """Usable per-core VMEM budget: physical capacity minus headroom for Mosaic
    internal scratch / semaphores.  ~56 MiB on 64-MiB v7x parts, up to ~112 MiB
    on 128-MiB v5e/v6e parts."""
    cap = 64 << 20  # conservative fallback (v7x per-core VMEM)
    try:
        cap = int(pltpu.get_tpu_info().vmem_capacity_bytes)
    except Exception:
        pass
    return min(cap - (8 << 20), 112 << 20)


def _tile_bytes(TB, D, H1_pad, H2_pad):
    """Conservative VMEM estimate for one TB-row batch tile.  Assumes the default
    double-buffered pipeline for every operand (including the constant-index
    weights, which are never actually re-DMA'd), so reality is only smaller."""
    weights = 2 * 2 * (D * H1_pad + H1_pad * H2_pad)      # bf16 w1/w2, 2 bufs each
    rows = 2 * 8 * 4 * (H1_pad + 2 * H2_pad)              # sublane-padded bias/w3 rows
    x_in = 2 * TB * D * 4                                 # double-buffered f32 x tile
    out = _round_up(TB, 8) * 1024                         # (TB,1) f32 out, 2 bufs, vreg-padded
    acts = TB * (2 * D + 6 * H1_pad + 8 * H2_pad)         # in-kernel temporaries (generous)
    return weights + rows + x_in + out + acts


def _choose_tile_b(B, D, H1_pad, H2_pad, budget):
    """Pick the batch tile.  Small batches use one exact (8-aligned) tile; larger
    batches use the biggest 128-multiple tile that fits the VMEM budget, halved if
    needed so there are >= 2 grid steps for v7x's two TensorCores."""
    if B <= 128:
        return _round_up(B, 8)
    tb = 128
    for cand in (1024, 512, 256, 128):
        if cand <= B and _tile_bytes(cand, D, H1_pad, H2_pad) + (4 << 20) <= budget:
            tb = cand
            break
    while tb > 128 and pl.cdiv(B, tb) < 2:
        tb //= 2
    return tb


def prepare_params(params):
    """One-time padding / casting of the weights into kernel-ready layout.
    Hoisted out of the forward so each call re-reads no weights in XLA."""
    w1, b1, w2, b2, w3, b3 = params
    D, H1 = w1.shape
    H2 = w2.shape[1]
    H1_pad = _round_up(H1, 128)
    H2_pad = _round_up(H2, 128)
    # Zero-padded feature columns stay exactly zero through bias/ReLU and the
    # final reduction, so padding never leaks into real outputs.
    w1p = jnp.zeros((D, H1_pad), jnp.bfloat16).at[:, :H1].set(w1.astype(jnp.bfloat16))
    w2p = jnp.zeros((H1_pad, H2_pad), jnp.bfloat16).at[:H1, :H2].set(w2.astype(jnp.bfloat16))
    b1p = jnp.zeros((1, H1_pad), jnp.float32).at[:, :H1].set(jnp.reshape(b1, (1, H1)))
    b2p = jnp.zeros((1, H2_pad), jnp.float32).at[:, :H2].set(jnp.reshape(b2, (1, H2)))
    w3_row = jnp.zeros((1, H2_pad), jnp.float32).at[:, :H2].set(jnp.reshape(w3, (1, H2)))
    b3s = jnp.asarray(b3, jnp.float32).reshape(1, 1)
    return (w1p, b1p, w2p, b2p, w3_row, b3s)


def neural_network_forward(x, prepared):
    """x: (B, C, H, W) or (B, D) float32.  prepared: output of prepare_params.
    Returns (B, 1) float32."""
    w1p, b1p, w2p, b2p, w3_row, b3s = prepared
    B = x.shape[0]
    x2d = x.reshape(B, -1).astype(jnp.float32)       # torch.nn.Flatten (row-major)
    D = x2d.shape[1]
    assert w1p.shape[0] == D, "flattened input width must match Linear fan-in"
    H1_pad = w1p.shape[1]
    H2_pad = w2p.shape[1]

    budget = _vmem_budget_bytes()
    TB = _choose_tile_b(B, D, H1_pad, H2_pad, budget)
    G = pl.cdiv(B, TB)
    B_pad = G * TB
    if B_pad != B:
        # Ragged last batch tile: zero-pad rows once (batch padding only — the
        # feature dim is never padded and x is never pre-cast).
        x2d = jnp.zeros((B_pad, D), x2d.dtype).at[:B].set(x2d)

    vmem_limit = int(min(max(_tile_bytes(TB, D, H1_pad, H2_pad) + (4 << 20),
                             16 << 20), budget))

    const = lambda shape: pl.BlockSpec(shape, lambda i: (0, 0))

    out = pl.pallas_call(
        _mlp_kernel,
        out_shape=jax.ShapeDtypeStruct((B_pad, 1), jnp.float32),
        grid=(G,),
        in_specs=[
            pl.BlockSpec((TB, D), lambda i: (i, 0)),   # x: batch-tiled f32 stream
            const((D, H1_pad)),                        # weights stay VMEM-resident
            const((1, H1_pad)),
            const((H1_pad, H2_pad)),
            const((1, H2_pad)),
            const((1, H2_pad)),                        # w3 lane-major row
            pl.BlockSpec(memory_space=pltpu.MemorySpace.SMEM),  # b3 scalar
        ],
        out_specs=pl.BlockSpec((TB, 1), lambda i: (i, 0)),
        compiler_params=pltpu.CompilerParams(
            dimension_semantics=("parallel",),   # shards batch tiles across v7x's 2 TCs
            vmem_limit_bytes=vmem_limit,
        ),
    )(x2d, w1p, b1p, w2p, b2p, w3_row, b3s)

    return out[:B]


def init_params(key, datasize):
    """Deterministic init mimicking torch.nn.Linear default (U[-1/sqrt(fan_in), +])."""
    h1 = datasize // 2
    h2 = datasize // 4
    keys = jax.random.split(key, 6)

    def linear(kw, kb, fan_in, fan_out):
        bound = 1.0 / math.sqrt(fan_in)
        w = jax.random.uniform(kw, (fan_in, fan_out), jnp.float32, -bound, bound)
        b = jax.random.uniform(kb, (1, fan_out), jnp.float32, -bound, bound)
        return w, b

    w1, b1 = linear(keys[0], keys[1], datasize, h1)
    w2, b2 = linear(keys[2], keys[3], h1, h2)
    w3, b3 = linear(keys[4], keys[5], h2, 1)
    return (w1, b1, w2, b2, w3, b3)


if __name__ == "__main__":
    key = jax.random.PRNGKey(0)
    k_x, k_p = jax.random.split(key)

    # NCHW input: (batch=2, channels=4, H=16, W=16) -> datasize = 1024
    B, C, H, W = 2, 4, 16, 16
    datasize = C * H * W
    x = jax.random.normal(k_x, (B, C, H, W), dtype=jnp.float32)

    params = init_params(k_p, datasize)
    prepared = prepare_params(params)            # one-time weight prep (hoisted)
    jax.block_until_ready(prepared)

    fwd = jax.jit(neural_network_forward)
    y = fwd(x, prepared)
    jax.block_until_ready(y)

    # Reference with the same bf16-operand / f32-accumulate math as the kernel.
    w1, b1, w2, b2, w3, b3 = params
    xf = x.reshape(B, -1)
    r1 = jnp.maximum(
        jnp.dot(xf.astype(jnp.bfloat16), w1.astype(jnp.bfloat16),
                preferred_element_type=jnp.float32) + b1, 0.0)
    r2 = jnp.maximum(
        jnp.dot(r1.astype(jnp.bfloat16), w2.astype(jnp.bfloat16),
                preferred_element_type=jnp.float32) + b2, 0.0)
    ref = jnp.sum(r2 * w3.reshape(1, -1), axis=-1, keepdims=True) + b3

    assert y.shape == (B, 1)
    assert jnp.allclose(y, ref, atol=1e-3, rtol=1e-3)

    print("KERNEL_OK")
</pallas_src>

<mosaic_0001>
module attributes {stable_mosaic.version = 11 : i64} {
  func.func @_mlp_kernel(%arg0: i32, %arg1: memref<8x1024xf32, #tpu.memory_space<vmem>>, %arg2: memref<1024x512xbf16, #tpu.memory_space<vmem>>, %arg3: memref<1x512xf32, #tpu.memory_space<vmem>>, %arg4: memref<512x256xbf16, #tpu.memory_space<vmem>>, %arg5: memref<1x256xf32, #tpu.memory_space<vmem>>, %arg6: memref<1x256xf32, #tpu.memory_space<vmem>>, %arg7: memref<1x1xf32, #tpu.memory_space<smem>>, %arg8: memref<8x1xf32, #tpu.memory_space<vmem>>) attributes {dimension_semantics = [#tpu.dimension_semantics<parallel>], iteration_bounds = array<i64: 1>, scalar_prefetch = 0 : i64, scratch_operands = 0 : i64, tpu.core_type = #tpu.core_type<tc>, window_params = [{transform_indices = @transform_0, window_bounds = array<i64: 8, 1024>}, {pipeline_mode = #tpu.pipeline_mode<synchronous>, transform_indices = @transform_1, window_bounds = array<i64: 1024, 512>}, {pipeline_mode = #tpu.pipeline_mode<synchronous>, transform_indices = @transform_2, window_bounds = array<i64: 1, 512>}, {pipeline_mode = #tpu.pipeline_mode<synchronous>, transform_indices = @transform_3, window_bounds = array<i64: 512, 256>}, {pipeline_mode = #tpu.pipeline_mode<synchronous>, transform_indices = @transform_4, window_bounds = array<i64: 1, 256>}, {pipeline_mode = #tpu.pipeline_mode<synchronous>, transform_indices = @transform_5, window_bounds = array<i64: 1, 256>}, {transform_indices = @transform_6, window_bounds = array<i64: 1, 1>}, {transform_indices = @transform_7, window_bounds = array<i64: 8, 1>}]} {
    %c0 = arith.constant 0 : index
    %c0_0 = arith.constant 0 : index
    %0 = vector.load %arg1[%c0, %c0_0] : memref<8x1024xf32, #tpu.memory_space<vmem>>, vector<8x1024xf32>
    %1 = arith.truncf %0 : vector<8x1024xf32> to vector<8x1024xbf16>
    %c0_1 = arith.constant 0 : index
    %c0_2 = arith.constant 0 : index
    %2 = vector.load %arg2[%c0_1, %c0_2] : memref<1024x512xbf16, #tpu.memory_space<vmem>>, vector<1024x512xbf16>
    %cst = arith.constant dense<0.000000e+00> : vector<8x512xf32>
    %3 = tpu.matmul %1, %2, %cst {dimension_numbers = #tpu.dot_dimension_numbers<[1], [0], [0], [1], [0, 0, 1, 1], [], []>} : vector<8x1024xbf16>, vector<1024x512xbf16>, vector<8x512xf32> -> vector<8x512xf32>
    %c0_3 = arith.constant 0 : index
    %c0_4 = arith.constant 0 : index
    %4 = vector.load %arg3[%c0_3, %c0_4] : memref<1x512xf32, #tpu.memory_space<vmem>>, vector<1x512xf32>
    %5 = vector.broadcast %4 : vector<1x512xf32> to vector<8x512xf32>
    %6 = arith.addf %3, %5 : vector<8x512xf32>
    %cst_5 = arith.constant 0.000000e+00 : f32
    %7 = vector.broadcast %cst_5 : f32 to vector<8x512xf32>
    %8 = arith.maximumf %6, %7 : vector<8x512xf32>
    %9 = arith.truncf %8 : vector<8x512xf32> to vector<8x512xbf16>
    %c0_6 = arith.constant 0 : index
    %c0_7 = arith.constant 0 : index
    %10 = vector.load %arg4[%c0_6, %c0_7] : memref<512x256xbf16, #tpu.memory_space<vmem>>, vector<512x256xbf16>
    %cst_8 = arith.constant dense<0.000000e+00> : vector<8x256xf32>
    %11 = tpu.matmul %9, %10, %cst_8 {dimension_numbers = #tpu.dot_dimension_numbers<[1], [0], [0], [1], [0, 0, 1, 1], [], []>} : vector<8x512xbf16>, vector<512x256xbf16>, vector<8x256xf32> -> vector<8x256xf32>
    %c0_9 = arith.constant 0 : index
    %c0_10 = arith.constant 0 : index
    %12 = vector.load %arg5[%c0_9, %c0_10] : memref<1x256xf32, #tpu.memory_space<vmem>>, vector<1x256xf32>
    %13 = vector.broadcast %12 : vector<1x256xf32> to vector<8x256xf32>
    %14 = arith.addf %11, %13 : vector<8x256xf32>
    %cst_11 = arith.constant 0.000000e+00 : f32
    %15 = vector.broadcast %cst_11 : f32 to vector<8x256xf32>
    %16 = arith.maximumf %14, %15 : vector<8x256xf32>
    %c0_12 = arith.constant 0 : index
    %c0_13 = arith.constant 0 : index
    %17 = vector.load %arg6[%c0_12, %c0_13] : memref<1x256xf32, #tpu.memory_space<vmem>>, vector<1x256xf32>
    %18 = vector.broadcast %17 : vector<1x256xf32> to vector<8x256xf32>
    %19 = arith.mulf %16, %18 : vector<8x256xf32>
    %cst_14 = arith.constant dense<0.000000e+00> : vector<8xf32>
    %20 = vector.multi_reduction <add>, %19, %cst_14 [1] : vector<8x256xf32> to vector<8xf32>
    %21 = vector.shape_cast %20 : vector<8xf32> to vector<8x1xf32>
    %c0_15 = arith.constant 0 : index
    %c0_16 = arith.constant 0 : index
    %22 = memref.load %arg7[%c0_15, %c0_16] : memref<1x1xf32, #tpu.memory_space<smem>>
    %23 = vector.broadcast %22 : f32 to vector<8x1xf32>
    %24 = arith.addf %21, %23 : vector<8x1xf32>
    %c0_17 = arith.constant 0 : index
    %c0_18 = arith.constant 0 : index
    %25 = vector.load %arg8[%c0_17, %c0_18] : memref<8x1xf32, #tpu.memory_space<vmem>>, vector<8x1xf32>
    tpu.vector_store %arg8[%c0_17, %c0_18], %24 {strides = array<i32>} : memref<8x1xf32, #tpu.memory_space<vmem>>, vector<8x1xf32>,
    return
  }
  func.func @transform_0(%arg0: i32) -> (i32, i32) {
    %c0_i32 = arith.constant 0 : i32
    %c0_i32_0 = arith.constant 0 : i32
    return %arg0, %c0_i32 : i32, i32
  }
  func.func @transform_1(%arg0: i32) -> (i32, i32) {
    %c0_i32 = arith.constant 0 : i32
    %c0_i32_0 = arith.constant 0 : i32
    %c0_i32_1 = arith.constant 0 : i32
    return %c0_i32, %c0_i32_0 : i32, i32
  }
  func.func @transform_2(%arg0: i32) -> (i32, i32) {
    %c0_i32 = arith.constant 0 : i32
    %c0_i32_0 = arith.constant 0 : i32
    %c0_i32_1 = arith.constant 0 : i32
    return %c0_i32, %c0_i32_0 : i32, i32
  }
  func.func @transform_3(%arg0: i32) -> (i32, i32) {
    %c0_i32 = arith.constant 0 : i32
    %c0_i32_0 = arith.constant 0 : i32
    %c0_i32_1 = arith.constant 0 : i32
    return %c0_i32, %c0_i32_0 : i32, i32
  }
  func.func @transform_4(%arg0: i32) -> (i32, i32) {
    %c0_i32 = arith.constant 0 : i32
    %c0_i32_0 = arith.constant 0 : i32
    %c0_i32_1 = arith.constant 0 : i32
    return %c0_i32, %c0_i32_0 : i32, i32
  }
  func.func @transform_5(%arg0: i32) -> (i32, i32) {
    %c0_i32 = arith.constant 0 : i32
    %c0_i32_0 = arith.constant 0 : i32
    %c0_i32_1 = arith.constant 0 : i32
    return %c0_i32, %c0_i32_0 : i32, i32
  }
  func.func @transform_6(%arg0: i32) -> (i32, i32) {
    %c0_i32 = arith.constant 0 : i32
    %c0_i32_0 = arith.constant 0 : i32
    %c0_i32_1 = arith.constant 0 : i32
    return %c0_i32, %c0_i32_0 : i32, i32
  }
  func.func @transform_7(%arg0: i32) -> (i32, i32) {
    %c0_i32 = arith.constant 0 : i32
    %c0_i32_0 = arith.constant 0 : i32
    return %arg0, %c0_i32 : i32, i32
  }
}

</mosaic_0001>

<bundles_post_ra>
// kernel: neural_network_forward.1
= control target key start
LH: loop header
LB: loop body
LE: loop exit
PB: predicated region body
PF: predicated region fallthrough
CT: control target
= control target key end

     0   :  { %13 = vsyncpa [#allocation4], 0  ;;  %s3474_s0 = inlined_call_operand.vmem [shape: f32[8,1024], index: 0, kind: input, shape index: {}]   ;;  %s3475_s1 = inlined_call_operand.hbm [shape: bf16[1024,512], index: 1, kind: input, shape index: {}]   ;;  %s3476_s2 = inlined_call_operand.vmem [shape: f32[1,512], index: 2, kind: input, shape index: {}]   ;;  %s3477_s3 = inlined_call_operand.hbm [shape: bf16[512,256], index: 3, kind: input, shape index: {}]   ;;  %s3478_s4 = inlined_call_operand.vmem [shape: f32[1,256], index: 4, kind: input, shape index: {}]   ;;  %s3479_s5 = inlined_call_operand.vmem [shape: f32[1,256], index: 5, kind: input, shape index: {}]   ;;  %s3480_s6 = inlined_call_operand.<no memory space> [shape: f32[1,1], index: 6, kind: input, shape index: {}]   ;;  %s3481_s7 = inlined_call_operand.vmem [shape: f32[8,1], index: 7, kind: output, shape index: {}]  }
   0x1   :  { %14 = vsyncpa [#allocation6], 0  ;;  %s3323_s24 = smov [#allocation3]  }
   0x2   :  { %s22_s25 = sshll.u32 %s3323_s24, 4  ;;  %s23_s25 = int_to_ptr.vmem [resolvable:$true] %s22_s25 }
   0x3   :  { %s3287_s26 = scalar_lea.vmem %s23_s25, 32768  ;;  %p3292_p1 = scmp.lt.s32.totalorder %s23_s25, %s23_s25 }
   0x4   :  { %p3288_p0 = scmp.ne.s32.totalorder %s23_s25, %s3287_s26  ;;  %p3293_p2 = scmp.lt.s32.totalorder %s3287_s26, %s3287_s26 }
   0x6   :  { %p3294_p3 = por %p3293_p2, %p3292_p1 }
   0x8   :  { %p3295_p4 = pnand %p3294_p3, %p3288_p0 }
   0xa   :  { %3298 = shalt.err (!%p3295_p4)
}
   0xb   :  { %s3324_s27 = smov 256   ;;  %s3325_s28 = smov 16  }
   0xc   :  { %28 = dma.hbm_to_vmem [thread:$0]  %s3475_s1, 32768, %s23_s25, [#allocation4], %s3324_s27, %s3324_s27, %s3325_s28  }
   0xd   :  { %s3326_s8 = smov [#allocation5]  }
   0xe   :  { %s36_s9 = sshll.u32 %s3326_s8, 4  ;;  %s37_s9 = int_to_ptr.vmem [resolvable:$true] %s36_s9 }
   0xf   :  { %s3307_s10 = scalar_lea.vmem %s37_s9, 8192  ;;  %p3312_p6 = scmp.lt.s32.totalorder %s37_s9, %s37_s9 }
  0x10   :  { %p3308_p5 = scmp.ne.s32.totalorder %s37_s9, %s3307_s10  ;;  %p3313_p7 = scmp.lt.s32.totalorder %s3307_s10, %s3307_s10 }
  0x12   :  { %p3314_p8 = por %p3313_p7, %p3312_p6 }
  0x14   :  { %p3315_p9 = pnand %p3314_p8, %p3308_p5 }
  0x16   :  { %3318 = shalt.err (!%p3315_p9)
}
  0x17   :  { %s3327_s11 = smov 128   ;;  %s3328_s12 = smov 8  }
  0x18   :  { %42 = dma.hbm_to_vmem [thread:$0]  %s3477_s3, 8192, %s37_s9, [#allocation6], %s3327_s11, %s3327_s11, %s3328_s12  }
  0x19   :  { %3319 = dma.done.wait [#allocation4], 32768  }
  0x1a   :  { %3320 = vsyncadd [#allocation4], 4294934528 }
  0x1b   :  { %3321 = dma.done.wait [#allocation6], 8192  }
  0x1c   :  { %3322 = vsyncadd [#allocation6], 4294959104  ;;  %v2799_v0 = vld [vmem:[#allocation3 + $0xe4] ss:$16 sps:$4 sm:$0xff]   ;;  %v2803_v2 = vld [vmem:[#allocation3 + $0xe0] ss:$16 sps:$4 sm:$0xff]  }
  0x1d   :  { %v2801_v1 = vld [vmem:[#allocation3 + $0x2e4] ss:$16 sps:$4 sm:$0xff]   ;;  %1629 = vmatprep.subr.bf16.mxu0 %v2799_v0  ;;  %v2804_v3 = vld [vmem:[#allocation3 + $0x2e0] ss:$16 sps:$4 sm:$0xff]   ;;  %v56_v46 = vld [vmem:[%s3474_s0 + $0x8] sm:$0xff]  ;;  %vm2465_vm0 = vcmask 7168  }
  0x1e   :  { %1670 = vmatprep.subr.bf16.mxu1 %v2801_v1  ;;  %v2805_v4 = vld [vmem:[#allocation3 + $0xc4] ss:$16 sps:$4 sm:$0xff]   ;;  %1630 = vmatpush1.bf16.msra.mxu0 %v2803_v2  ;;  %v2809_v6 = vld [vmem:[#allocation3 + $0xc0] ss:$16 sps:$4 sm:$0xff]   ;;  %v3378_v49 = vpack.c.bf16 %v56_v46, %v56_v46  ;;  %v58_v50 = vld [vmem:[%s3474_s0 + $0x18] sm:$0xff] }
  0x1f   :  { %1671 = vmatpush1.bf16.msra.mxu1 %v2804_v3  ;;  %v2807_v5 = vld [vmem:[#allocation3 + $0x2c4] ss:$16 sps:$4 sm:$0xff]   ;;  %1631 = vmatprep.subr.bf16.mxu0 %v2805_v4  ;;  %v2810_v7 = vld [vmem:[#allocation3 + $0x2c0] ss:$16 sps:$4 sm:$0xff]   ;;  %v3383_v52 = vpack.c.bf16 %v58_v50, %v58_v50 }
  0x20   :  { %1672 = vmatprep.subr.bf16.mxu1 %v2807_v5  ;;  %v2811_v8 = vld [vmem:[#allocation3 + $0xa4] ss:$16 sps:$4 sm:$0xff]   ;;  %v2815_v10 = vld [vmem:[#allocation3 + $0xa0] ss:$16 sps:$4 sm:$0xff]   ;;  %1661 = vmatprep.mubr.bf16.mxu0 %v3378_v49 }
  0x21   :  { %v2813_v9 = vld [vmem:[#allocation3 + $0x2a4] ss:$16 sps:$4 sm:$0xff]   ;;  %v2816_v11 = vld [vmem:[#allocation3 + $0x2a0] ss:$16 sps:$4 sm:$0xff]   ;;  %1702 = vmatprep.mubr.bf16.mxu1 %v3383_v52 }
  0x22   :  { %1632 = vmatpush1.bf16.msra.mxu0 %v2809_v6  ;;  %v2817_v12 = vld [vmem:[#allocation3 + $0x84] ss:$16 sps:$4 sm:$0xff]   ;;  %v2821_v14 = vld [vmem:[#allocation3 + $0x80] ss:$16 sps:$4 sm:$0xff]  }
  0x23   :  { %1673 = vmatpush1.bf16.msra.mxu1 %v2810_v7  ;;  %1633 = vmatprep.subr.bf16.mxu0 %v2811_v8  ;;  %v2819_v13 = vld [vmem:[#allocation3 + $0x284] ss:$16 sps:$4 sm:$0xff]   ;;  %v2822_v15 = vld [vmem:[#allocation3 + $0x280] ss:$16 sps:$4 sm:$0xff]  }
  0x24   :  { %1674 = vmatprep.subr.bf16.mxu1 %v2813_v9  ;;  %v2823_v16 = vld [vmem:[#allocation3 + $0x64] ss:$16 sps:$4 sm:$0xff]   ;;  %v2827_v18 = vld [vmem:[#allocation3 + $0x60] ss:$16 sps:$4 sm:$0xff]  }
  0x25   :  { %v2825_v17 = vld [vmem:[#allocation3 + $0x264] ss:$16 sps:$4 sm:$0xff]   ;;  %v2828_v19 = vld [vmem:[#allocation3 + $0x260] ss:$16 sps:$4 sm:$0xff]  }
  0x26   :  { %1634 = vmatpush1.bf16.msra.mxu0 %v2815_v10  ;;  %v2829_v20 = vld [vmem:[#allocation3 + $0x44] ss:$16 sps:$4 sm:$0xff]   ;;  %v2833_v22 = vld [vmem:[#allocation3 + $0x40] ss:$16 sps:$4 sm:$0xff]  }
  0x27   :  { %1675 = vmatpush1.bf16.msra.mxu1 %v2816_v11  ;;  %1635 = vmatprep.subr.bf16.mxu0 %v2817_v12  ;;  %v2831_v21 = vld [vmem:[#allocation3 + $0x244] ss:$16 sps:$4 sm:$0xff]   ;;  %v2834_v23 = vld [vmem:[#allocation3 + $0x240] ss:$16 sps:$4 sm:$0xff]  }
  0x28   :  { %1676 = vmatprep.subr.bf16.mxu1 %v2819_v13  ;;  %v2835_v24 = vld [vmem:[#allocation3 + $0x24] ss:$16 sps:$4 sm:$0xff]   ;;  %v2839_v26 = vld [vmem:[#allocation3 + $0x20] ss:$16 sps:$4 sm:$0xff]  }
  0x29   :  { %v2837_v25 = vld [vmem:[#allocation3 + $0x224] ss:$16 sps:$4 sm:$0xff]   ;;  %v2840_v27 = vld [vmem:[#allocation3 + $0x220] ss:$16 sps:$4 sm:$0xff]  }
  0x2a   :  { %1636 = vmatpush1.bf16.msra.mxu0 %v2821_v14  ;;  %v2841_v28 = vld [vmem:[#allocation3 + $0x4] ss:$16 sps:$4 sm:$0xff]   ;;  %v2845_v30 = vld [vmem:[#allocation3] ss:$16 sps:$4 sm:$0xff]  }
  0x2b   :  { %1677 = vmatpush1.bf16.msra.mxu1 %v2822_v15  ;;  %1637 = vmatprep.subr.bf16.mxu0 %v2823_v16  ;;  %v2843_v29 = vld [vmem:[#allocation3 + $0x204] ss:$16 sps:$4 sm:$0xff]   ;;  %v2846_v31 = vld [vmem:[#allocation3 + $0x200] ss:$16 sps:$4 sm:$0xff]  }
  0x2c   :  { %1678 = vmatprep.subr.bf16.mxu1 %v2825_v17  ;;  %v2847_v32 = vld [vmem:[#allocation3 + $0x1e4] ss:$16 sps:$4 sm:$0xff]   ;;  %v2851_v34 = vld [vmem:[#allocation3 + $0x1e0] ss:$16 sps:$4 sm:$0xff]  }
  0x2d   :  { %v2849_v33 = vld [vmem:[#allocation3 + $0x3e4] ss:$16 sps:$4 sm:$0xff]   ;;  %v2852_v35 = vld [vmem:[#allocation3 + $0x3e0] ss:$16 sps:$4 sm:$0xff]  }
  0x2e   :  { %1638 = vmatpush1.bf16.msra.mxu0 %v2827_v18  ;;  %v2853_v36 = vld [vmem:[#allocation3 + $0x1c4] ss:$16 sps:$4 sm:$0xff]   ;;  %v2857_v38 = vld [vmem:[#allocation3 + $0x1c0] ss:$16 sps:$4 sm:$0xff]  }
  0x2f   :  { %1679 = vmatpush1.bf16.msra.mxu1 %v2828_v19  ;;  %1639 = vmatprep.subr.bf16.mxu0 %v2829_v20  ;;  %v2855_v37 = vld [vmem:[#allocation3 + $0x3c4] ss:$16 sps:$4 sm:$0xff]   ;;  %v2858_v39 = vld [vmem:[#allocation3 + $0x3c0] ss:$16 sps:$4 sm:$0xff]  }
  0x30   :  { %1680 = vmatprep.subr.bf16.mxu1 %v2831_v21  ;;  %v2859_v40 = vld [vmem:[#allocation3 + $0x1a4] ss:$16 sps:$4 sm:$0xff]   ;;  %v2863_v42 = vld [vmem:[#allocation3 + $0x1a0] ss:$16 sps:$4 sm:$0xff]  }
  0x31   :  { %v2861_v41 = vld [vmem:[#allocation3 + $0x3a4] ss:$16 sps:$4 sm:$0xff]   ;;  %v2864_v43 = vld [vmem:[#allocation3 + $0x3a0] ss:$16 sps:$4 sm:$0xff]  }
  0x32   :  { %1640 = vmatpush1.bf16.msra.mxu0 %v2833_v22  ;;  %v2865_v44 = vld [vmem:[#allocation3 + $0x184] ss:$16 sps:$4 sm:$0xff]   ;;  %v2869_v47 = vld [vmem:[#allocation3 + $0x180] ss:$16 sps:$4 sm:$0xff]  }
  0x33   :  { %1681 = vmatpush1.bf16.msra.mxu1 %v2834_v23  ;;  %1641 = vmatprep.subr.bf16.mxu0 %v2835_v24  ;;  %v2867_v45 = vld [vmem:[#allocation3 + $0x384] ss:$16 sps:$4 sm:$0xff]   ;;  %v2870_v48 = vld [vmem:[#allocation3 + $0x380] ss:$16 sps:$4 sm:$0xff]  }
  0x34   :  { %1682 = vmatprep.subr.bf16.mxu1 %v2837_v25  ;;  %v2871_v51 = vld [vmem:[#allocation3 + $0x164] ss:$16 sps:$4 sm:$0xff]   ;;  %v2875_v54 = vld [vmem:[#allocation3 + $0x160] ss:$16 sps:$4 sm:$0xff]  }
  0x35   :  { %v2873_v53 = vld [vmem:[#allocation3 + $0x364] ss:$16 sps:$4 sm:$0xff]   ;;  %v2876_v55 = vld [vmem:[#allocation3 + $0x360] ss:$16 sps:$4 sm:$0xff]  }
  0x36   :  { %1642 = vmatpush1.bf16.msra.mxu0 %v2839_v26  ;;  %v2877_v56 = vld [vmem:[#allocation3 + $0x144] ss:$16 sps:$4 sm:$0xff]   ;;  %v2881_v58 = vld [vmem:[#allocation3 + $0x140] ss:$16 sps:$4 sm:$0xff]  }
  0x37   :  { %1683 = vmatpush1.bf16.msra.mxu1 %v2840_v27  ;;  %1643 = vmatprep.subr.bf16.mxu0 %v2841_v28  ;;  %v2879_v57 = vld [vmem:[#allocation3 + $0x344] ss:$16 sps:$4 sm:$0xff]   ;;  %v2882_v59 = vld [vmem:[#allocation3 + $0x340] ss:$16 sps:$4 sm:$0xff]  }
  0x38   :  { %1684 = vmatprep.subr.bf16.mxu1 %v2843_v29  ;;  %v2883_v60 = vld [vmem:[#allocation3 + $0x124] ss:$16 sps:$4 sm:$0xff]   ;;  %v2887_v62 = vld [vmem:[#allocation3 + $0x120] ss:$16 sps:$4 sm:$0xff]  }
  0x39   :  { %v2885_v61 = vld [vmem:[#allocation3 + $0x324] ss:$16 sps:$4 sm:$0xff]   ;;  %v2888_v63 = vld [vmem:[#allocation3 + $0x320] ss:$16 sps:$4 sm:$0xff]  }
  0x3a   :  { %1644 = vmatpush1.bf16.msra.mxu0 %v2845_v30  ;;  %v2889_v0 = vld [vmem:[#allocation3 + $0x104] ss:$16 sps:$4 sm:$0xff]   ;;  %v2893_v2 = vld [vmem:[#allocation3 + $0x100] ss:$16 sps:$4 sm:$0xff]  }
  0x3b   :  { %1685 = vmatpush1.bf16.msra.mxu1 %v2846_v31  ;;  %1645 = vmatprep.subr.bf16.mxu0 %v2847_v32  ;;  %v2891_v1 = vld [vmem:[#allocation3 + $0x304] ss:$16 sps:$4 sm:$0xff]   ;;  %v2894_v3 = vld [vmem:[#allocation3 + $0x300] ss:$16 sps:$4 sm:$0xff]  }
  0x3c   :  { %1686 = vmatprep.subr.bf16.mxu1 %v2849_v33  ;;  %v55_v4 = vld [vmem:[%s3474_s0] sm:$0xff]  ;;  %v57_v5 = vld [vmem:[%s3474_s0 + $0x10] sm:$0xff] }
  0x3d   :  { %v2897_v6 = vld [vmem:[#allocation3 + $0x4e4] ss:$16 sps:$4 sm:$0xff]   ;;  %v3393_v8 = vpack.c.bf16 %v55_v4, %v55_v4  ;;  %v3395_v9 = vpack.c.bf16 %v57_v5, %v57_v5  ;;  %v2895_v10 = vld [vmem:[#allocation3 + $0x4e0] ss:$16 sps:$4 sm:$0xff]  }
  0x3e   :  { %1646 = vmatpush2.bf16.msra.mxu0 %v2851_v34  ;;  %v2900_v7 = vld [vmem:[#allocation3 + $0x6e4] ss:$16 sps:$4 sm:$0xff]   ;;  %v2898_v11 = vld [vmem:[#allocation3 + $0x6e0] ss:$16 sps:$4 sm:$0xff]   ;;  %v60_v34 = vld [vmem:[%s3474_s0 + $0x28] sm:$0xff] }
  0x3f   :  { %1687 = vmatpush2.bf16.msra.mxu1 %v2852_v35  ;;  %1647 = vmatprep.subr.bf16.mxu0 %v2853_v36  ;;  %v2903_v12 = vld [vmem:[#allocation3 + $0x4c4] ss:$16 sps:$4 sm:$0xff]   ;;  %v2901_v14 = vld [vmem:[#allocation3 + $0x4c0] ss:$16 sps:$4 sm:$0xff]  }
  0x40   :  { %1688 = vmatprep.subr.bf16.mxu1 %v2855_v37  ;;  %v2906_v13 = vld [vmem:[#allocation3 + $0x6c4] ss:$16 sps:$4 sm:$0xff]   ;;  %v2904_v15 = vld [vmem:[#allocation3 + $0x6c0] ss:$16 sps:$4 sm:$0xff]   ;;  %v3402_v37 = vpack.c.bf16 %v60_v34, %v60_v34  ;;  %v3009_v34 = vld [vmem:[#allocation3 + $0x88] ss:$16 sps:$4 sm:$0xff]  }
  0x41   :  { %v2909_v16 = vld [vmem:[#allocation3 + $0x4a4] ss:$16 sps:$4 sm:$0xff]   ;;  %v2907_v18 = vld [vmem:[#allocation3 + $0x4a0] ss:$16 sps:$4 sm:$0xff]  }
  0x42   :  { %1648 = vmatpush2.bf16.msra.mxu0 %v2857_v38  ;;  %v2912_v17 = vld [vmem:[#allocation3 + $0x6a4] ss:$16 sps:$4 sm:$0xff]   ;;  %v2910_v19 = vld [vmem:[#allocation3 + $0x6a0] ss:$16 sps:$4 sm:$0xff]   ;;  %v62_v38 = vld [vmem:[%s3474_s0 + $0x38] sm:$0xff] }
  0x43   :  { %1689 = vmatpush2.bf16.msra.mxu1 %v2858_v39  ;;  %1649 = vmatprep.subr.bf16.mxu0 %v2859_v40  ;;  %v2915_v20 = vld [vmem:[#allocation3 + $0x484] ss:$16 sps:$4 sm:$0xff]   ;;  %v2913_v22 = vld [vmem:[#allocation3 + $0x480] ss:$16 sps:$4 sm:$0xff]   ;;  %v3407_v40 = vpack.c.bf16 %v62_v38, %v62_v38  ;;  %v3020_v38 = vld [vmem:[#allocation3 + $0x26c] ss:$16 sps:$4 sm:$0xff]  }
  0x44   :  { %1690 = vmatprep.subr.bf16.mxu1 %v2861_v41  ;;  %v2918_v21 = vld [vmem:[#allocation3 + $0x684] ss:$16 sps:$4 sm:$0xff]   ;;  %v2916_v23 = vld [vmem:[#allocation3 + $0x680] ss:$16 sps:$4 sm:$0xff]  }
  0x45   :  { %v2921_v24 = vld [vmem:[#allocation3 + $0x464] ss:$16 sps:$4 sm:$0xff]   ;;  %v2919_v26 = vld [vmem:[#allocation3 + $0x460] ss:$16 sps:$4 sm:$0xff]  }
  0x46   :  { %1650 = vmatpush2.bf16.msra.mxu0 %v2863_v42  ;;  %v2924_v25 = vld [vmem:[#allocation3 + $0x664] ss:$16 sps:$4 sm:$0xff]   ;;  %v2922_v27 = vld [vmem:[#allocation3 + $0x660] ss:$16 sps:$4 sm:$0xff]  }
  0x47   :  { %1691 = vmatpush2.bf16.msra.mxu1 %v2864_v43  ;;  %1651 = vmatprep.subr.bf16.mxu0 %v2865_v44  ;;  %v2927_v28 = vld [vmem:[#allocation3 + $0x444] ss:$16 sps:$4 sm:$0xff]   ;;  %v2925_v30 = vld [vmem:[#allocation3 + $0x440] ss:$16 sps:$4 sm:$0xff]  }
  0x48   :  { %1692 = vmatprep.subr.bf16.mxu1 %v2867_v45  ;;  %v2930_v29 = vld [vmem:[#allocation3 + $0x644] ss:$16 sps:$4 sm:$0xff]   ;;  %v2928_v31 = vld [vmem:[#allocation3 + $0x640] ss:$16 sps:$4 sm:$0xff]  }
  0x49   :  { %v2933_v32 = vld [vmem:[#allocation3 + $0x424] ss:$16 sps:$4 sm:$0xff]   ;;  %v2931_v35 = vld [vmem:[#allocation3 + $0x420] ss:$16 sps:$4 sm:$0xff]  }
  0x4a   :  { %1652 = vmatpush2.bf16.msra.mxu0 %v2869_v47  ;;  %v2936_v33 = vld [vmem:[#allocation3 + $0x624] ss:$16 sps:$4 sm:$0xff]   ;;  %v2934_v36 = vld [vmem:[#allocation3 + $0x620] ss:$16 sps:$4 sm:$0xff]  }
  0x4b   :  { %1693 = vmatpush2.bf16.msra.mxu1 %v2870_v48  ;;  %1653 = vmatprep.subr.bf16.mxu0 %v2871_v51  ;;  %v2939_v39 = vld [vmem:[#allocation3 + $0x404] ss:$16 sps:$4 sm:$0xff]   ;;  %v2937_v42 = vld [vmem:[#allocation3 + $0x400] ss:$16 sps:$4 sm:$0xff]  }
  0x4c   :  { %1694 = vmatprep.subr.bf16.mxu1 %v2873_v53  ;;  %v2942_v41 = vld [vmem:[#allocation3 + $0x604] ss:$16 sps:$4 sm:$0xff]   ;;  %v2940_v43 = vld [vmem:[#allocation3 + $0x600] ss:$16 sps:$4 sm:$0xff]  }
  0x4d   :  { %v2945_v44 = vld [vmem:[#allocation3 + $0x5e4] ss:$16 sps:$4 sm:$0xff]   ;;  %v2943_v46 = vld [vmem:[#allocation3 + $0x5e0] ss:$16 sps:$4 sm:$0xff]  }
  0x4e   :  { %1654 = vmatpush2.bf16.msra.mxu0 %v2875_v54  ;;  %v2948_v45 = vld [vmem:[#allocation3 + $0x7e4] ss:$16 sps:$4 sm:$0xff]   ;;  %v2946_v47 = vld [vmem:[#allocation3 + $0x7e0] ss:$16 sps:$4 sm:$0xff]  }
  0x4f   :  { %1695 = vmatpush2.bf16.msra.mxu1 %v2876_v55  ;;  %1655 = vmatprep.subr.bf16.mxu0 %v2877_v56  ;;  %v2951_v48 = vld [vmem:[#allocation3 + $0x5c4] ss:$16 sps:$4 sm:$0xff]   ;;  %v2949_v51 = vld [vmem:[#allocation3 + $0x5c0] ss:$16 sps:$4 sm:$0xff]  }
  0x50   :  { %1696 = vmatprep.subr.bf16.mxu1 %v2879_v57  ;;  %v2954_v50 = vld [vmem:[#allocation3 + $0x7c4] ss:$16 sps:$4 sm:$0xff]   ;;  %v2952_v53 = vld [vmem:[#allocation3 + $0x7c0] ss:$16 sps:$4 sm:$0xff]  }
  0x51   :  { %v2957_v54 = vld [vmem:[#allocation3 + $0x5a4] ss:$16 sps:$4 sm:$0xff]   ;;  %v2955_v56 = vld [vmem:[#allocation3 + $0x5a0] ss:$16 sps:$4 sm:$0xff]  }
  0x52   :  { %1656 = vmatpush2.bf16.msra.mxu0 %v2881_v58  ;;  %v2960_v55 = vld [vmem:[#allocation3 + $0x7a4] ss:$16 sps:$4 sm:$0xff]   ;;  %v2958_v57 = vld [vmem:[#allocation3 + $0x7a0] ss:$16 sps:$4 sm:$0xff]  }
  0x53   :  { %1697 = vmatpush2.bf16.msra.mxu1 %v2882_v59  ;;  %1657 = vmatprep.subr.bf16.mxu0 %v2883_v60  ;;  %v2963_v58 = vld [vmem:[#allocation3 + $0x584] ss:$16 sps:$4 sm:$0xff]   ;;  %v2961_v60 = vld [vmem:[#allocation3 + $0x580] ss:$16 sps:$4 sm:$0xff]  }
  0x54   :  { %1698 = vmatprep.subr.bf16.mxu1 %v2885_v61  ;;  %v2966_v59 = vld [vmem:[#allocation3 + $0x784] ss:$16 sps:$4 sm:$0xff]   ;;  %v2964_v61 = vld [vmem:[#allocation3 + $0x780] ss:$16 sps:$4 sm:$0xff]  }
  0x55   :  { %v2973_v4 = vld [vmem:[#allocation3 + $0x540] ss:$16 sps:$4 sm:$0xff]  }
  0x56   :  { %1658 = vmatpush2.bf16.msra.mxu0 %v2887_v62  ;;  %v2969_v62 = vld [vmem:[#allocation3 + $0x564] ss:$16 sps:$4 sm:$0xff]   ;;  %v2976_v5 = vld [vmem:[#allocation3 + $0x740] ss:$16 sps:$4 sm:$0xff]  }
  0x57   :  { %1699 = vmatpush2.bf16.msra.mxu1 %v2888_v63  ;;  %1659 = vmatprep.subr.bf16.mxu0 %v2889_v0  ;;  %v2972_v63 = vld [vmem:[#allocation3 + $0x764] ss:$16 sps:$4 sm:$0xff]   ;;  %v2967_v0 = vld [vmem:[#allocation3 + $0x560] ss:$16 sps:$4 sm:$0xff]  }
  0x58   :  { %1700 = vmatprep.subr.bf16.mxu1 %v2891_v1  ;;  %v2970_v1 = vld [vmem:[#allocation3 + $0x760] ss:$16 sps:$4 sm:$0xff]  }
  0x5a   :  { %1660 = vmatpush2.bf16.msra.mxu0 %v2893_v2  ;;  %v2975_v2 = vld [vmem:[#allocation3 + $0x544] ss:$16 sps:$4 sm:$0xff]  }
  0x5b   :  { %1701 = vmatpush2.bf16.msra.mxu1 %v2894_v3  ;;  %1711 = vmatprep.subr.bf16.mxu0 %v2897_v6  ;;  %v2978_v3 = vld [vmem:[#allocation3 + $0x744] ss:$16 sps:$4 sm:$0xff]  }
  0x5c   :  { %1752 = vmatprep.subr.bf16.mxu1 %v2900_v7  ;;  %v2981_v6 = vld [vmem:[#allocation3 + $0x524] ss:$16 sps:$4 sm:$0xff]  }
  0x5d   :  { %1662 = vmatmul.mubr.bf16.vlgmr.msra.gmra.mxu0 %v3393_v8  ;;  %v2984_v7 = vld [vmem:[#allocation3 + $0x724] ss:$16 sps:$4 sm:$0xff]  }
  0x5e   :  { %1703 = vmatmul.mubr.bf16.vlgmr.msra.gmra.mxu1 %v3395_v9  ;;  %1712 = vmatpush1.bf16.msra.mxu0 %v2895_v10  ;;  %v2979_v10 = vld [vmem:[#allocation3 + $0x520] ss:$16 sps:$4 sm:$0xff]  }
  0x5f   :  { %1753 = vmatpush1.bf16.msra.mxu1 %v2898_v11  ;;  %1713 = vmatprep.subr.bf16.mxu0 %v2903_v12  ;;  %v2982_v11 = vld [vmem:[#allocation3 + $0x720] ss:$16 sps:$4 sm:$0xff]   ;;  %v2987_v12 = vld [vmem:[#allocation3 + $0x504] ss:$16 sps:$4 sm:$0xff]  }
  0x60   :  { %1754 = vmatprep.subr.bf16.mxu1 %v2906_v13  ;;  %1743 = vmatprep.mubr.bf16.mxu0 %v3402_v37  ;;  %v2990_v13 = vld [vmem:[#allocation3 + $0x704] ss:$16 sps:$4 sm:$0xff]  }
  0x61   :  { %1784 = vmatprep.mubr.bf16.mxu1 %v3407_v40 }
  0x62   :  { %1714 = vmatpush1.bf16.msra.mxu0 %v2901_v14  ;;  %v2985_v14 = vld [vmem:[#allocation3 + $0x500] ss:$16 sps:$4 sm:$0xff]  }
  0x63   :  { %1755 = vmatpush1.bf16.msra.mxu1 %v2904_v15  ;;  %1715 = vmatprep.subr.bf16.mxu0 %v2909_v16  ;;  %v2988_v15 = vld [vmem:[#allocation3 + $0x700] ss:$16 sps:$4 sm:$0xff]  }
  0x64   :  { %1756 = vmatprep.subr.bf16.mxu1 %v2912_v17  ;;  %v59_v16 = vld [vmem:[%s3474_s0 + $0x20] sm:$0xff]  ;;  %v61_v17 = vld [vmem:[%s3474_s0 + $0x30] sm:$0xff] }
  0x66   :  { %1716 = vmatpush1.bf16.msra.mxu0 %v2907_v18  ;;  %v2993_v18 = vld [vmem:[#allocation3 + $0xec] ss:$16 sps:$4 sm:$0xff]  }
  0x67   :  { %1757 = vmatpush1.bf16.msra.mxu1 %v2910_v19  ;;  %1717 = vmatprep.subr.bf16.mxu0 %v2915_v20  ;;  %v2996_v19 = vld [vmem:[#allocation3 + $0x2ec] ss:$16 sps:$4 sm:$0xff]   ;;  %v3417_v20 = vpack.c.bf16 %v59_v16, %v59_v16 }
  0x68   :  { %1758 = vmatprep.subr.bf16.mxu1 %v2918_v21  ;;  %v3419_v21 = vpack.c.bf16 %v61_v17, %v61_v17  ;;  %v3077_v16 = vld [vmem:[#allocation3 + $0x12c] ss:$16 sps:$4 sm:$0xff]  }
  0x69   :  { %v3080_v17 = vld [vmem:[#allocation3 + $0x32c] ss:$16 sps:$4 sm:$0xff]  }
  0x6a   :  { %1718 = vmatpush1.bf16.msra.mxu0 %v2913_v22  ;;  %v2991_v22 = vld [vmem:[#allocation3 + $0xe8] ss:$16 sps:$4 sm:$0xff]  }
  0x6b   :  { %1759 = vmatpush1.bf16.msra.mxu1 %v2916_v23  ;;  %1719 = vmatprep.subr.bf16.mxu0 %v2921_v24  ;;  %v2994_v23 = vld [vmem:[#allocation3 + $0x2e8] ss:$16 sps:$4 sm:$0xff]   ;;  %v2999_v24 = vld [vmem:[#allocation3 + $0xcc] ss:$16 sps:$4 sm:$0xff]  }
  0x6c   :  { %1760 = vmatprep.subr.bf16.mxu1 %v2924_v25  ;;  %v3002_v25 = vld [vmem:[#allocation3 + $0x2cc] ss:$16 sps:$4 sm:$0xff]  }
  0x6e   :  { %1720 = vmatpush1.bf16.msra.mxu0 %v2919_v26  ;;  %v2997_v26 = vld [vmem:[#allocation3 + $0xc8] ss:$16 sps:$4 sm:$0xff]  }
  0x6f   :  { %1761 = vmatpush1.bf16.msra.mxu1 %v2922_v27  ;;  %1721 = vmatprep.subr.bf16.mxu0 %v2927_v28  ;;  %v3000_v27 = vld [vmem:[#allocation3 + $0x2c8] ss:$16 sps:$4 sm:$0xff]   ;;  %v3005_v28 = vld [vmem:[#allocation3 + $0xac] ss:$16 sps:$4 sm:$0xff]  }
  0x70   :  { %1762 = vmatprep.subr.bf16.mxu1 %v2930_v29  ;;  %v3008_v29 = vld [vmem:[#allocation3 + $0x2ac] ss:$16 sps:$4 sm:$0xff]  }
  0x72   :  { %1722 = vmatpush1.bf16.msra.mxu0 %v2925_v30  ;;  %v3003_v30 = vld [vmem:[#allocation3 + $0xa8] ss:$16 sps:$4 sm:$0xff]  }
  0x73   :  { %1763 = vmatpush1.bf16.msra.mxu1 %v2928_v31  ;;  %1723 = vmatprep.subr.bf16.mxu0 %v2933_v32  ;;  %v3006_v31 = vld [vmem:[#allocation3 + $0x2a8] ss:$16 sps:$4 sm:$0xff]   ;;  %v3011_v32 = vld [vmem:[#allocation3 + $0x8c] ss:$16 sps:$4 sm:$0xff]  }
  0x74   :  { %1764 = vmatprep.subr.bf16.mxu1 %v2936_v33  ;;  %v3014_v33 = vld [vmem:[#allocation3 + $0x28c] ss:$16 sps:$4 sm:$0xff]  }
  0x76   :  { %1724 = vmatpush1.bf16.msra.mxu0 %v2931_v35  ;;  %v3012_v35 = vld [vmem:[#allocation3 + $0x288] ss:$16 sps:$4 sm:$0xff]  }
  0x77   :  { %1765 = vmatpush1.bf16.msra.mxu1 %v2934_v36  ;;  %1725 = vmatprep.subr.bf16.mxu0 %v2939_v39  ;;  %v3017_v36 = vld [vmem:[#allocation3 + $0x6c] ss:$16 sps:$4 sm:$0xff]   ;;  %v3015_v39 = vld [vmem:[#allocation3 + $0x68] ss:$16 sps:$4 sm:$0xff]  }
  0x78   :  { %1766 = vmatprep.subr.bf16.mxu1 %v2942_v41  ;;  %v3026_v41 = vld [vmem:[#allocation3 + $0x24c] ss:$16 sps:$4 sm:$0xff]  }
  0x7a   :  { %1726 = vmatpush1.bf16.msra.mxu0 %v2937_v42  ;;  %v3021_v42 = vld [vmem:[#allocation3 + $0x48] ss:$16 sps:$4 sm:$0xff]  }
  0x7b   :  { %1767 = vmatpush1.bf16.msra.mxu1 %v2940_v43  ;;  %1727 = vmatprep.subr.bf16.mxu0 %v2945_v44  ;;  %v3024_v43 = vld [vmem:[#allocation3 + $0x248] ss:$16 sps:$4 sm:$0xff]   ;;  %v3029_v44 = vld [vmem:[#allocation3 + $0x2c] ss:$16 sps:$4 sm:$0xff]  }
  0x7c   :  { %1768 = vmatprep.subr.bf16.mxu1 %v2948_v45  ;;  %v3032_v45 = vld [vmem:[#allocation3 + $0x22c] ss:$16 sps:$4 sm:$0xff]  }
  0x7e   :  { %1728 = vmatpush2.bf16.msra.mxu0 %v2943_v46  ;;  %v3027_v46 = vld [vmem:[#allocation3 + $0x28] ss:$16 sps:$4 sm:$0xff]  }
  0x7f   :  { %1769 = vmatpush2.bf16.msra.mxu1 %v2946_v47  ;;  %1729 = vmatprep.subr.bf16.mxu0 %v2951_v48  ;;  %v3030_v47 = vld [vmem:[#allocation3 + $0x228] ss:$16 sps:$4 sm:$0xff]   ;;  %v3035_v48 = vld [vmem:[#allocation3 + $0xc] ss:$16 sps:$4 sm:$0xff]  }
  0x80   :  { %1770 = vmatprep.subr.bf16.mxu1 %v2954_v50  ;;  %v3038_v50 = vld [vmem:[#allocation3 + $0x20c] ss:$16 sps:$4 sm:$0xff]  }
  0x82   :  { %1730 = vmatpush2.bf16.msra.mxu0 %v2949_v51  ;;  %v3033_v51 = vld [vmem:[#allocation3 + $0x8] ss:$16 sps:$4 sm:$0xff]  }
  0x83   :  { %1771 = vmatpush2.bf16.msra.mxu1 %v2952_v53  ;;  %1731 = vmatprep.subr.bf16.mxu0 %v2957_v54  ;;  %v3036_v53 = vld [vmem:[#allocation3 + $0x208] ss:$16 sps:$4 sm:$0xff]   ;;  %v3041_v54 = vld [vmem:[#allocation3 + $0x1ec] ss:$16 sps:$4 sm:$0xff]  }
  0x84   :  { %1772 = vmatprep.subr.bf16.mxu1 %v2960_v55  ;;  %v3044_v55 = vld [vmem:[#allocation3 + $0x3ec] ss:$16 sps:$4 sm:$0xff]  }
  0x86   :  { %1732 = vmatpush2.bf16.msra.mxu0 %v2955_v56  ;;  %v3039_v56 = vld [vmem:[#allocation3 + $0x1e8] ss:$16 sps:$4 sm:$0xff]  }
  0x87   :  { %1773 = vmatpush2.bf16.msra.mxu1 %v2958_v57  ;;  %1733 = vmatprep.subr.bf16.mxu0 %v2963_v58  ;;  %v3042_v57 = vld [vmem:[#allocation3 + $0x3e8] ss:$16 sps:$4 sm:$0xff]   ;;  %v3047_v58 = vld [vmem:[#allocation3 + $0x1cc] ss:$16 sps:$4 sm:$0xff]  }
  0x88   :  { %1774 = vmatprep.subr.bf16.mxu1 %v2966_v59  ;;  %v3050_v59 = vld [vmem:[#allocation3 + $0x3cc] ss:$16 sps:$4 sm:$0xff]  }
  0x8a   :  { %1734 = vmatpush2.bf16.msra.mxu0 %v2961_v60  ;;  %v3045_v60 = vld [vmem:[#allocation3 + $0x1c8] ss:$16 sps:$4 sm:$0xff]  }
  0x8b   :  { %1775 = vmatpush2.bf16.msra.mxu1 %v2964_v61  ;;  %1735 = vmatprep.subr.bf16.mxu0 %v2969_v62  ;;  %v3048_v61 = vld [vmem:[#allocation3 + $0x3c8] ss:$16 sps:$4 sm:$0xff]   ;;  %v3053_v62 = vld [vmem:[#allocation3 + $0x1ac] ss:$16 sps:$4 sm:$0xff]  }
  0x8c   :  { %1776 = vmatprep.subr.bf16.mxu1 %v2972_v63  ;;  %v3056_v63 = vld [vmem:[#allocation3 + $0x3ac] ss:$16 sps:$4 sm:$0xff]  }
  0x8e   :  { %1736 = vmatpush2.bf16.msra.mxu0 %v2967_v0  ;;  %v3051_v0 = vld [vmem:[#allocation3 + $0x1a8] ss:$16 sps:$4 sm:$0xff]  }
  0x8f   :  { %1777 = vmatpush2.bf16.msra.mxu1 %v2970_v1  ;;  %1737 = vmatprep.subr.bf16.mxu0 %v2975_v2  ;;  %v3054_v1 = vld [vmem:[#allocation3 + $0x3a8] ss:$16 sps:$4 sm:$0xff]   ;;  %v3059_v2 = vld [vmem:[#allocation3 + $0x18c] ss:$16 sps:$4 sm:$0xff]  }
  0x90   :  { %1778 = vmatprep.subr.bf16.mxu1 %v2978_v3  ;;  %v3062_v3 = vld [vmem:[#allocation3 + $0x38c] ss:$16 sps:$4 sm:$0xff]  }
  0x92   :  { %1738 = vmatpush2.bf16.msra.mxu0 %v2973_v4  ;;  %v3057_v4 = vld [vmem:[#allocation3 + $0x188] ss:$16 sps:$4 sm:$0xff]  }
  0x93   :  { %1779 = vmatpush2.bf16.msra.mxu1 %v2976_v5  ;;  %1739 = vmatprep.subr.bf16.mxu0 %v2981_v6  ;;  %v3060_v5 = vld [vmem:[#allocation3 + $0x388] ss:$16 sps:$4 sm:$0xff]   ;;  %v3065_v6 = vld [vmem:[#allocation3 + $0x16c] ss:$16 sps:$4 sm:$0xff]  }
  0x94   :  { %1780 = vmatprep.subr.bf16.mxu1 %v2984_v7  ;;  %v3068_v7 = vld [vmem:[#allocation3 + $0x36c] ss:$16 sps:$4 sm:$0xff]  }
  0x96   :  { %1740 = vmatpush2.bf16.msra.mxu0 %v2979_v10  ;;  %v3063_v10 = vld [vmem:[#allocation3 + $0x168] ss:$16 sps:$4 sm:$0xff]  }
  0x97   :  { %1781 = vmatpush2.bf16.msra.mxu1 %v2982_v11  ;;  %1741 = vmatprep.subr.bf16.mxu0 %v2987_v12  ;;  %v3066_v11 = vld [vmem:[#allocation3 + $0x368] ss:$16 sps:$4 sm:$0xff]   ;;  %v3071_v12 = vld [vmem:[#allocation3 + $0x14c] ss:$16 sps:$4 sm:$0xff]  }
  0x98   :  { %1782 = vmatprep.subr.bf16.mxu1 %v2990_v13  ;;  %v3074_v13 = vld [vmem:[#allocation3 + $0x34c] ss:$16 sps:$4 sm:$0xff]  }
  0x9a   :  { %1742 = vmatpush2.bf16.msra.mxu0 %v2985_v14  ;;  %v3069_v14 = vld [vmem:[#allocation3 + $0x148] ss:$16 sps:$4 sm:$0xff]  }
  0x9b   :  { %1783 = vmatpush2.bf16.msra.mxu1 %v2988_v15  ;;  %1793 = vmatprep.subr.bf16.mxu0 %v2993_v18  ;;  %v3072_v15 = vld [vmem:[#allocation3 + $0x348] ss:$16 sps:$4 sm:$0xff]  }
  0x9c   :  { %1834 = vmatprep.subr.bf16.mxu1 %v2996_v19  ;;  %v3075_v18 = vld [vmem:[#allocation3 + $0x128] ss:$16 sps:$4 sm:$0xff]  }
  0x9d   :  { %1744 = vmatmul.mubr.bf16.vlgmr.msra.gmra.mxu0 %v3417_v20  ;;  %v3078_v19 = vld [vmem:[#allocation3 + $0x328] ss:$16 sps:$4 sm:$0xff]  }
  0x9e   :  { %1785 = vmatmul.mubr.bf16.vlgmr.msra.gmra.mxu1 %v3419_v21  ;;  %1794 = vmatpush1.bf16.msra.mxu0 %v2991_v22  ;;  %v3083_v22 = vld [vmem:[#allocation3 + $0x10c] ss:$16 sps:$4 sm:$0xff]  }
  0x9f   :  { %1835 = vmatpush1.bf16.msra.mxu1 %v2994_v23  ;;  %1795 = vmatprep.subr.bf16.mxu0 %v2999_v24  ;;  %v3086_v23 = vld [vmem:[#allocation3 + $0x30c] ss:$16 sps:$4 sm:$0xff]   ;;  %v3081_v24 = vld [vmem:[#allocation3 + $0x108] ss:$16 sps:$4 sm:$0xff]  }
  0xa0   :  { %1836 = vmatprep.subr.bf16.mxu1 %v3002_v25  ;;  %1825 = vmatprep.mubr.bf16.mxu0 %v3378_v49  ;;  %v3018_v49 = vld [vmem:[#allocation3 + $0x268] ss:$16 sps:$4 sm:$0xff]  }
  0xa1   :  { %1866 = vmatprep.mubr.bf16.mxu1 %v3383_v52  ;;  %v3023_v52 = vld [vmem:[#allocation3 + $0x4c] ss:$16 sps:$4 sm:$0xff]   ;;  %v3084_v25 = vld [vmem:[#allocation3 + $0x308] ss:$16 sps:$4 sm:$0xff]  }
  0xa2   :  { %1796 = vmatpush1.bf16.msra.mxu0 %v2997_v26  ;;  %v3089_v26 = vld [vmem:[#allocation3 + $0x4ec] ss:$16 sps:$4 sm:$0xff]  }
  0xa3   :  { %1837 = vmatpush1.bf16.msra.mxu1 %v3000_v27  ;;  %1797 = vmatprep.subr.bf16.mxu0 %v3005_v28  ;;  %v3092_v27 = vld [vmem:[#allocation3 + $0x6ec] ss:$16 sps:$4 sm:$0xff]   ;;  %v3087_v28 = vld [vmem:[#allocation3 + $0x4e8] ss:$16 sps:$4 sm:$0xff]  }
  0xa4   :  { %1838 = vmatprep.subr.bf16.mxu1 %v3008_v29  ;;  %v3090_v29 = vld [vmem:[#allocation3 + $0x6e8] ss:$16 sps:$4 sm:$0xff]  }
  0xa6   :  { %1798 = vmatpush1.bf16.msra.mxu0 %v3003_v30  ;;  %v3095_v30 = vld [vmem:[#allocation3 + $0x4cc] ss:$16 sps:$4 sm:$0xff]  }
  0xa7   :  { %1839 = vmatpush1.bf16.msra.mxu1 %v3006_v31  ;;  %1799 = vmatprep.subr.bf16.mxu0 %v3011_v32  ;;  %v3098_v31 = vld [vmem:[#allocation3 + $0x6cc] ss:$16 sps:$4 sm:$0xff]   ;;  %v3093_v32 = vld [vmem:[#allocation3 + $0x4c8] ss:$16 sps:$4 sm:$0xff]  }
  0xa8   :  { %1840 = vmatprep.subr.bf16.mxu1 %v3014_v33  ;;  %v3096_v33 = vld [vmem:[#allocation3 + $0x6c8] ss:$16 sps:$4 sm:$0xff]  }
  0xaa   :  { %1800 = vmatpush1.bf16.msra.mxu0 %v3009_v34  ;;  %v3101_v34 = vld [vmem:[#allocation3 + $0x4ac] ss:$16 sps:$4 sm:$0xff]  }
  0xab   :  { %1841 = vmatpush1.bf16.msra.mxu1 %v3012_v35  ;;  %1801 = vmatprep.subr.bf16.mxu0 %v3017_v36  ;;  %v3104_v35 = vld [vmem:[#allocation3 + $0x6ac] ss:$16 sps:$4 sm:$0xff]   ;;  %v3099_v36 = vld [vmem:[#allocation3 + $0x4a8] ss:$16 sps:$4 sm:$0xff]  }
  0xac   :  { %1842 = vmatprep.subr.bf16.mxu1 %v3020_v38  ;;  %v3102_v38 = vld [vmem:[#allocation3 + $0x6a8] ss:$16 sps:$4 sm:$0xff]  }
  0xae   :  { %1802 = vmatpush1.bf16.msra.mxu0 %v3015_v39  ;;  %v3107_v39 = vld [vmem:[#allocation3 + $0x48c] ss:$16 sps:$4 sm:$0xff]  }
  0xaf   :  { %1843 = vmatpush1.bf16.msra.mxu1 %v3018_v49  ;;  %1803 = vmatprep.subr.bf16.mxu0 %v3023_v52  ;;  %v3105_v49 = vld [vmem:[#allocation3 + $0x488] ss:$16 sps:$4 sm:$0xff]   ;;  %v3113_v52 = vld [vmem:[#allocation3 + $0x46c] ss:$16 sps:$4 sm:$0xff]  }
  0xb0   :  { %1844 = vmatprep.subr.bf16.mxu1 %v3026_v41  ;;  %v3116_v41 = vld [vmem:[#allocation3 + $0x66c] ss:$16 sps:$4 sm:$0xff]  }
  0xb2   :  { %1804 = vmatpush1.bf16.msra.mxu0 %v3021_v42  ;;  %v3111_v42 = vld [vmem:[#allocation3 + $0x468] ss:$16 sps:$4 sm:$0xff]  }
  0xb3   :  { %1845 = vmatpush1.bf16.msra.mxu1 %v3024_v43  ;;  %1805 = vmatprep.subr.bf16.mxu0 %v3029_v44  ;;  %v3122_v43 = vld [vmem:[#allocation3 + $0x64c] ss:$16 sps:$4 sm:$0xff]   ;;  %v3117_v44 = vld [vmem:[#allocation3 + $0x448] ss:$16 sps:$4 sm:$0xff]  }
  0xb4   :  { %1846 = vmatprep.subr.bf16.mxu1 %v3032_v45  ;;  %v3120_v45 = vld [vmem:[#allocation3 + $0x648] ss:$16 sps:$4 sm:$0xff]  }
  0xb6   :  { %1806 = vmatpush1.bf16.msra.mxu0 %v3027_v46  ;;  %v3125_v46 = vld [vmem:[#allocation3 + $0x42c] ss:$16 sps:$4 sm:$0xff]  }
  0xb7   :  { %1847 = vmatpush1.bf16.msra.mxu1 %v3030_v47  ;;  %1807 = vmatprep.subr.bf16.mxu0 %v3035_v48  ;;  %v3128_v47 = vld [vmem:[#allocation3 + $0x62c] ss:$16 sps:$4 sm:$0xff]   ;;  %v3123_v48 = vld [vmem:[#allocation3 + $0x428] ss:$16 sps:$4 sm:$0xff]  }
  0xb8   :  { %1848 = vmatprep.subr.bf16.mxu1 %v3038_v50  ;;  %v3126_v50 = vld [vmem:[#allocation3 + $0x628] ss:$16 sps:$4 sm:$0xff]  }
  0xba   :  { %1808 = vmatpush1.bf16.msra.mxu0 %v3033_v51  ;;  %v3131_v51 = vld [vmem:[#allocation3 + $0x40c] ss:$16 sps:$4 sm:$0xff]  }
  0xbb   :  { %1849 = vmatpush1.bf16.msra.mxu1 %v3036_v53  ;;  %1809 = vmatprep.subr.bf16.mxu0 %v3041_v54  ;;  %v3134_v53 = vld [vmem:[#allocation3 + $0x60c] ss:$16 sps:$4 sm:$0xff]   ;;  %v3129_v54 = vld [vmem:[#allocation3 + $0x408] ss:$16 sps:$4 sm:$0xff]  }
  0xbc   :  { %1850 = vmatprep.subr.bf16.mxu1 %v3044_v55  ;;  %v3132_v55 = vld [vmem:[#allocation3 + $0x608] ss:$16 sps:$4 sm:$0xff]  }
  0xbe   :  { %1810 = vmatpush2.bf16.msra.mxu0 %v3039_v56  ;;  %v3137_v56 = vld [vmem:[#allocation3 + $0x5ec] ss:$16 sps:$4 sm:$0xff]  }
  0xbf   :  { %1851 = vmatpush2.bf16.msra.mxu1 %v3042_v57  ;;  %1811 = vmatprep.subr.bf16.mxu0 %v3047_v58  ;;  %v3140_v57 = vld [vmem:[#allocation3 + $0x7ec] ss:$16 sps:$4 sm:$0xff]   ;;  %v3135_v58 = vld [vmem:[#allocation3 + $0x5e8] ss:$16 sps:$4 sm:$0xff]  }
  0xc0   :  { %1852 = vmatprep.subr.bf16.mxu1 %v3050_v59  ;;  %v3138_v59 = vld [vmem:[#allocation3 + $0x7e8] ss:$16 sps:$4 sm:$0xff]  }
  0xc2   :  { %1812 = vmatpush2.bf16.msra.mxu0 %v3045_v60  ;;  %v3143_v60 = vld [vmem:[#allocation3 + $0x5cc] ss:$16 sps:$4 sm:$0xff]  }
  0xc3   :  { %1853 = vmatpush2.bf16.msra.mxu1 %v3048_v61  ;;  %1813 = vmatprep.subr.bf16.mxu0 %v3053_v62  ;;  %v3146_v61 = vld [vmem:[#allocation3 + $0x7cc] ss:$16 sps:$4 sm:$0xff]   ;;  %v3141_v62 = vld [vmem:[#allocation3 + $0x5c8] ss:$16 sps:$4 sm:$0xff]  }
  0xc4   :  { %1854 = vmatprep.subr.bf16.mxu1 %v3056_v63  ;;  %v3144_v63 = vld [vmem:[#allocation3 + $0x7c8] ss:$16 sps:$4 sm:$0xff]  }
  0xc6   :  { %1814 = vmatpush2.bf16.msra.mxu0 %v3051_v0  ;;  %v3149_v0 = vld [vmem:[#allocation3 + $0x5ac] ss:$16 sps:$4 sm:$0xff]  }
  0xc7   :  { %1855 = vmatpush2.bf16.msra.mxu1 %v3054_v1  ;;  %1815 = vmatprep.subr.bf16.mxu0 %v3059_v2  ;;  %v3152_v1 = vld [vmem:[#allocation3 + $0x7ac] ss:$16 sps:$4 sm:$0xff]   ;;  %v3147_v2 = vld [vmem:[#allocation3 + $0x5a8] ss:$16 sps:$4 sm:$0xff]  }
  0xc8   :  { %1856 = vmatprep.subr.bf16.mxu1 %v3062_v3  ;;  %v3150_v3 = vld [vmem:[#allocation3 + $0x7a8] ss:$16 sps:$4 sm:$0xff]  }
  0xca   :  { %1816 = vmatpush2.bf16.msra.mxu0 %v3057_v4  ;;  %v3155_v4 = vld [vmem:[#allocation3 + $0x58c] ss:$16 sps:$4 sm:$0xff]  }
  0xcb   :  { %1857 = vmatpush2.bf16.msra.mxu1 %v3060_v5  ;;  %1817 = vmatprep.subr.bf16.mxu0 %v3065_v6  ;;  %v3158_v5 = vld [vmem:[#allocation3 + $0x78c] ss:$16 sps:$4 sm:$0xff]   ;;  %v3153_v6 = vld [vmem:[#allocation3 + $0x588] ss:$16 sps:$4 sm:$0xff]  }
  0xcc   :  { %1858 = vmatprep.subr.bf16.mxu1 %v3068_v7  ;;  %v3156_v7 = vld [vmem:[#allocation3 + $0x788] ss:$16 sps:$4 sm:$0xff]  }
  0xce   :  { %1818 = vmatpush2.bf16.msra.mxu0 %v3063_v10  ;;  %v3161_v10 = vld [vmem:[#allocation3 + $0x56c] ss:$16 sps:$4 sm:$0xff]  }
  0xcf   :  { %1859 = vmatpush2.bf16.msra.mxu1 %v3066_v11  ;;  %1819 = vmatprep.subr.bf16.mxu0 %v3071_v12  ;;  %v3164_v11 = vld [vmem:[#allocation3 + $0x76c] ss:$16 sps:$4 sm:$0xff]   ;;  %v3159_v12 = vld [vmem:[#allocation3 + $0x568] ss:$16 sps:$4 sm:$0xff]  }
  0xd0   :  { %1860 = vmatprep.subr.bf16.mxu1 %v3074_v13  ;;  %v3162_v13 = vld [vmem:[#allocation3 + $0x768] ss:$16 sps:$4 sm:$0xff]  }
  0xd2   :  { %1820 = vmatpush2.bf16.msra.mxu0 %v3069_v14  ;;  %v3167_v14 = vld [vmem:[#allocation3 + $0x54c] ss:$16 sps:$4 sm:$0xff]  }
  0xd3   :  { %1861 = vmatpush2.bf16.msra.mxu1 %v3072_v15  ;;  %1821 = vmatprep.subr.bf16.mxu0 %v3077_v16  ;;  %v3170_v15 = vld [vmem:[#allocation3 + $0x74c] ss:$16 sps:$4 sm:$0xff]   ;;  %v3165_v16 = vld [vmem:[#allocation3 + $0x548] ss:$16 sps:$4 sm:$0xff]  }
  0xd4   :  { %1862 = vmatprep.subr.bf16.mxu1 %v3080_v17  ;;  %v3168_v17 = vld [vmem:[#allocation3 + $0x748] ss:$16 sps:$4 sm:$0xff]  }
  0xd6   :  { %1822 = vmatpush2.bf16.msra.mxu0 %v3075_v18  ;;  %v3173_v18 = vld [vmem:[#allocation3 + $0x52c] ss:$16 sps:$4 sm:$0xff]  }
  0xd7   :  { %1863 = vmatpush2.bf16.msra.mxu1 %v3078_v19  ;;  %1823 = vmatprep.subr.bf16.mxu0 %v3083_v22  ;;  %v3176_v19 = vld [vmem:[#allocation3 + $0x72c] ss:$16 sps:$4 sm:$0xff]   ;;  %v3171_v22 = vld [vmem:[#allocation3 + $0x528] ss:$16 sps:$4 sm:$0xff]  }
  0xd8   :  { %1864 = vmatprep.subr.bf16.mxu1 %v3086_v23  ;;  %v3174_v23 = vld [vmem:[#allocation3 + $0x728] ss:$16 sps:$4 sm:$0xff]  }
  0xda   :  { %1824 = vmatpush2.bf16.msra.mxu0 %v3081_v24  ;;  %v3179_v24 = vld [vmem:[#allocation3 + $0x50c] ss:$16 sps:$4 sm:$0xff]  }
  0xdb   :  { %1865 = vmatpush2.bf16.msra.mxu1 %v3084_v25  ;;  %1875 = vmatprep.subr.bf16.mxu0 %v3089_v26  ;;  %v3182_v25 = vld [vmem:[#allocation3 + $0x70c] ss:$16 sps:$4 sm:$0xff]   ;;  %v3177_v26 = vld [vmem:[#allocation3 + $0x508] ss:$16 sps:$4 sm:$0xff]  }
  0xdc   :  { %1916 = vmatprep.subr.bf16.mxu1 %v3092_v27  ;;  %v3180_v27 = vld [vmem:[#allocation3 + $0x708] ss:$16 sps:$4 sm:$0xff]  }
  0xdd   :  { %1826 = vmatmul.mubr.bf16.vlgmr.msra.gmra.mxu0 %v3393_v8  ;;  %v3110_v8 = vld [vmem:[#allocation3 + $0x68c] ss:$16 sps:$4 sm:$0xff]  }
  0xde   :  { %1867 = vmatmul.mubr.bf16.vlgmr.msra.gmra.mxu1 %v3395_v9  ;;  %1876 = vmatpush1.bf16.msra.mxu0 %v3087_v28  ;;  %v3108_v9 = vld [vmem:[#allocation3 + $0x688] ss:$16 sps:$4 sm:$0xff]   ;;  %v3185_v28 = vld [vmem:[#allocation5 + $0x74] ss:$8 sps:$4 sm:$0xff]  }
  0xdf   :  { %1917 = vmatpush1.bf16.msra.mxu1 %v3090_v29  ;;  %1877 = vmatprep.subr.bf16.mxu0 %v3095_v30  ;;  %v3183_v29 = vld [vmem:[#allocation5 + $0x70] ss:$8 sps:$4 sm:$0xff]   ;;  %v3188_v30 = vld [vmem:[#allocation5 + $0x64] ss:$8 sps:$4 sm:$0xff]  }
  0xe0   :  { %1918 = vmatprep.subr.bf16.mxu1 %v3098_v31  ;;  %1907 = vmatprep.mubr.bf16.mxu0 %v3402_v37  ;;  %v3114_v37 = vld [vmem:[#allocation3 + $0x668] ss:$16 sps:$4 sm:$0xff]  }
  0xe1   :  { %1948 = vmatprep.mubr.bf16.mxu1 %v3407_v40  ;;  %v3119_v40 = vld [vmem:[#allocation3 + $0x44c] ss:$16 sps:$4 sm:$0xff]  }
  0xe2   :  { %1878 = vmatpush1.bf16.msra.mxu0 %v3093_v32 }
  0xe3   :  { %1919 = vmatpush1.bf16.msra.mxu1 %v3096_v33  ;;  %1879 = vmatprep.subr.bf16.mxu0 %v3101_v34  ;;  %v3186_v33 = vld [vmem:[#allocation5 + $0x60] ss:$8 sps:$4 sm:$0xff]  }
  0xe4   :  { %1920 = vmatprep.subr.bf16.mxu1 %v3104_v35 }
  0xe6   :  { %1880 = vmatpush1.bf16.msra.mxu0 %v3099_v36  ;;  %v3191_v36 = vld [vmem:[#allocation5 + $0x54] ss:$8 sps:$4 sm:$0xff]  }
  0xe7   :  { %1921 = vmatpush1.bf16.msra.mxu1 %v3102_v38  ;;  %1881 = vmatprep.subr.bf16.mxu0 %v3107_v39 }
  0xe8   :  { %1922 = vmatprep.subr.bf16.mxu1 %v3110_v8  ;;  %v3189_v8 = vld [vmem:[#allocation5 + $0x50] ss:$8 sps:$4 sm:$0xff]  }
  0xea   :  { %1882 = vmatpush1.bf16.msra.mxu0 %v3105_v49 }
  0xeb   :  { %1923 = vmatpush1.bf16.msra.mxu1 %v3108_v9  ;;  %1883 = vmatprep.subr.bf16.mxu0 %v3113_v52  ;;  %v3194_v52 = vld [vmem:[#allocation5 + $0x44] ss:$8 sps:$4 sm:$0xff]  }
  0xec   :  { %1924 = vmatprep.subr.bf16.mxu1 %v3116_v41  ;;  %v3231_v41 = vld [vmem:[#allocation5 + $0x170] ss:$8 sps:$4 sm:$0xff]  }
  0xee   :  { %1884 = vmatpush1.bf16.msra.mxu0 %v3111_v42  ;;  %v3236_v42 = vld [vmem:[#allocation5 + $0x164] ss:$8 sps:$4 sm:$0xff]  }
  0xef   :  { %1925 = vmatpush1.bf16.msra.mxu1 %v3114_v37  ;;  %1885 = vmatprep.subr.bf16.mxu0 %v3119_v40  ;;  %v3234_v37 = vld [vmem:[#allocation5 + $0x160] ss:$8 sps:$4 sm:$0xff]   ;;  %v3197_v40 = vld [vmem:[#allocation5 + $0x34] ss:$8 sps:$4 sm:$0xff]  }
  0xf0   :  { %1926 = vmatprep.subr.bf16.mxu1 %v3122_v43  ;;  %v3239_v43 = vld [vmem:[#allocation5 + $0x154] ss:$8 sps:$4 sm:$0xff]  }
  0xf2   :  { %1886 = vmatpush1.bf16.msra.mxu0 %v3117_v44  ;;  %v3195_v44 = vld [vmem:[#allocation5 + $0x30] ss:$8 sps:$4 sm:$0xff]  }
  0xf3   :  { %1927 = vmatpush1.bf16.msra.mxu1 %v3120_v45  ;;  %1887 = vmatprep.subr.bf16.mxu0 %v3125_v46  ;;  %v3237_v45 = vld [vmem:[#allocation5 + $0x150] ss:$8 sps:$4 sm:$0xff]   ;;  %v3200_v46 = vld [vmem:[#allocation5 + $0x24] ss:$8 sps:$4 sm:$0xff]  }
  0xf4   :  { %1928 = vmatprep.subr.bf16.mxu1 %v3128_v47  ;;  %v3242_v47 = vld [vmem:[#allocation5 + $0x144] ss:$8 sps:$4 sm:$0xff]  }
  0xf6   :  { %1888 = vmatpush1.bf16.msra.mxu0 %v3123_v48  ;;  %v3198_v48 = vld [vmem:[#allocation5 + $0x20] ss:$8 sps:$4 sm:$0xff]  }
  0xf7   :  { %1929 = vmatpush1.bf16.msra.mxu1 %v3126_v50  ;;  %1889 = vmatprep.subr.bf16.mxu0 %v3131_v51  ;;  %v3240_v50 = vld [vmem:[#allocation5 + $0x140] ss:$8 sps:$4 sm:$0xff]   ;;  %v3203_v51 = vld [vmem:[#allocation5 + $0x14] ss:$8 sps:$4 sm:$0xff]  }
  0xf8   :  { %1930 = vmatprep.subr.bf16.mxu1 %v3134_v53  ;;  %v3245_v53 = vld [vmem:[#allocation5 + $0x134] ss:$8 sps:$4 sm:$0xff]  }
  0xfa   :  { %1890 = vmatpush1.bf16.msra.mxu0 %v3129_v54  ;;  %v3201_v54 = vld [vmem:[#allocation5 + $0x10] ss:$8 sps:$4 sm:$0xff]  }
  0xfb   :  { %1931 = vmatpush1.bf16.msra.mxu1 %v3132_v55  ;;  %1891 = vmatprep.subr.bf16.mxu0 %v3137_v56  ;;  %v3243_v55 = vld [vmem:[#allocation5 + $0x130] ss:$8 sps:$4 sm:$0xff]   ;;  %v3206_v56 = vld [vmem:[#allocation5 + $0x4] ss:$8 sps:$4 sm:$0xff]  }
  0xfc   :  { %1932 = vmatprep.subr.bf16.mxu1 %v3140_v57  ;;  %v3248_v57 = vld [vmem:[#allocation5 + $0x124] ss:$8 sps:$4 sm:$0xff]  }
  0xfe   :  { %1892 = vmatpush2.bf16.msra.mxu0 %v3135_v58  ;;  %v3204_v58 = vld [vmem:[#allocation5] ss:$8 sps:$4 sm:$0xff]  }
  0xff   :  { %1933 = vmatpush2.bf16.msra.mxu1 %v3138_v59  ;;  %1893 = vmatprep.subr.bf16.mxu0 %v3143_v60  ;;  %v3246_v59 = vld [vmem:[#allocation5 + $0x120] ss:$8 sps:$4 sm:$0xff]   ;;  %v3209_v60 = vld [vmem:[#allocation5 + $0xf4] ss:$8 sps:$4 sm:$0xff]  }
 0x100   :  { %1934 = vmatprep.subr.bf16.mxu1 %v3146_v61  ;;  %v3251_v61 = vld [vmem:[#allocation5 + $0x114] ss:$8 sps:$4 sm:$0xff]  }
 0x102   :  { %1894 = vmatpush2.bf16.msra.mxu0 %v3141_v62  ;;  %v3207_v62 = vld [vmem:[#allocation5 + $0xf0] ss:$8 sps:$4 sm:$0xff]  }
 0x103   :  { %1935 = vmatpush2.bf16.msra.mxu1 %v3144_v63  ;;  %1895 = vmatprep.subr.bf16.mxu0 %v3149_v0  ;;  %v3249_v63 = vld [vmem:[#allocation5 + $0x110] ss:$8 sps:$4 sm:$0xff]   ;;  %v3212_v0 = vld [vmem:[#allocation5 + $0xe4] ss:$8 sps:$4 sm:$0xff]  }
 0x104   :  { %1936 = vmatprep.subr.bf16.mxu1 %v3152_v1  ;;  %v3254_v1 = vld [vmem:[#allocation5 + $0x104] ss:$8 sps:$4 sm:$0xff]  }
 0x106   :  { %1896 = vmatpush2.bf16.msra.mxu0 %v3147_v2  ;;  %v3210_v2 = vld [vmem:[#allocation5 + $0xe0] ss:$8 sps:$4 sm:$0xff]  }
 0x107   :  { %1937 = vmatpush2.bf16.msra.mxu1 %v3150_v3  ;;  %1897 = vmatprep.subr.bf16.mxu0 %v3155_v4  ;;  %v3252_v3 = vld [vmem:[#allocation5 + $0x100] ss:$8 sps:$4 sm:$0xff]   ;;  %v3215_v4 = vld [vmem:[#allocation5 + $0xd4] ss:$8 sps:$4 sm:$0xff]  }
 0x108   :  { %1938 = vmatprep.subr.bf16.mxu1 %v3158_v5  ;;  %v3257_v5 = vld [vmem:[#allocation5 + $0x1f4] ss:$8 sps:$4 sm:$0xff]  }
 0x10a   :  { %1898 = vmatpush2.bf16.msra.mxu0 %v3153_v6  ;;  %v3213_v6 = vld [vmem:[#allocation5 + $0xd0] ss:$8 sps:$4 sm:$0xff]  }
 0x10b   :  { %1939 = vmatpush2.bf16.msra.mxu1 %v3156_v7  ;;  %1899 = vmatprep.subr.bf16.mxu0 %v3161_v10  ;;  %v3255_v7 = vld [vmem:[#allocation5 + $0x1f0] ss:$8 sps:$4 sm:$0xff]   ;;  %v3218_v10 = vld [vmem:[#allocation5 + $0xc4] ss:$8 sps:$4 sm:$0xff]  }
 0x10c   :  { %1940 = vmatprep.subr.bf16.mxu1 %v3164_v11  ;;  %v3260_v11 = vld [vmem:[#allocation5 + $0x1e4] ss:$8 sps:$4 sm:$0xff]  }
 0x10e   :  { %1900 = vmatpush2.bf16.msra.mxu0 %v3159_v12  ;;  %v3216_v12 = vld [vmem:[#allocation5 + $0xc0] ss:$8 sps:$4 sm:$0xff]  }
 0x10f   :  { %1941 = vmatpush2.bf16.msra.mxu1 %v3162_v13  ;;  %1901 = vmatprep.subr.bf16.mxu0 %v3167_v14  ;;  %v3258_v13 = vld [vmem:[#allocation5 + $0x1e0] ss:$8 sps:$4 sm:$0xff]   ;;  %v3221_v14 = vld [vmem:[#allocation5 + $0xb4] ss:$8 sps:$4 sm:$0xff]  }
 0x110   :  { %1942 = vmatprep.subr.bf16.mxu1 %v3170_v15  ;;  %v3263_v15 = vld [vmem:[#allocation5 + $0x1d4] ss:$8 sps:$4 sm:$0xff]  }
 0x112   :  { %1902 = vmatpush2.bf16.msra.mxu0 %v3165_v16  ;;  %v329_v16 = vlaneseq }
 0x113   :  { %1943 = vmatpush2.bf16.msra.mxu1 %v3168_v17  ;;  %1903 = vmatprep.subr.bf16.mxu0 %v3173_v18  ;;  %v3219_v17 = vld [vmem:[#allocation5 + $0xb0] ss:$8 sps:$4 sm:$0xff]  }
 0x114   :  { %1944 = vmatprep.subr.bf16.mxu1 %v3176_v19  ;;  %v3261_v18 = vld [vmem:[#allocation5 + $0x1d0] ss:$8 sps:$4 sm:$0xff]   ;;  %v3224_v19 = vld [vmem:[#allocation5 + $0xa4] ss:$8 sps:$4 sm:$0xff]  }
 0x116   :  { %1904 = vmatpush2.bf16.msra.mxu0 %v3171_v22  ;;  %v3266_v22 = vld [vmem:[#allocation5 + $0x1c4] ss:$8 sps:$4 sm:$0xff]  }
 0x117   :  { %1945 = vmatpush2.bf16.msra.mxu1 %v3174_v23  ;;  %1905 = vmatprep.subr.bf16.mxu0 %v3179_v24  ;;  %v3439_v23 = vshrl.u32 %v329_v16, 7  ;;  %v3222_v24 = vld [vmem:[#allocation5 + $0xa0] ss:$8 sps:$4 sm:$0xff]  }
 0x118   :  { %1946 = vmatprep.subr.bf16.mxu1 %v3182_v25  ;;  %v3264_v25 = vld [vmem:[#allocation5 + $0x1c0] ss:$8 sps:$4 sm:$0xff]  }
 0x11a   :  { %1906 = vmatpush2.bf16.msra.mxu0 %v3177_v26  ;;  %v3227_v26 = vld [vmem:[#allocation5 + $0x94] ss:$8 sps:$4 sm:$0xff]  }
 0x11b   :  { %1947 = vmatpush2.bf16.msra.mxu1 %v3180_v27  ;;  %2361 = vmatprep.subr.bf16.mxu0 %v3185_v28  ;;  %v3269_v27 = vld [vmem:[#allocation5 + $0x1b4] ss:$8 sps:$4 sm:$0xff]   ;;  %v3442_v28 = vsub.s32 0, %v3439_v23 }
 0x11d   :  { %v3429_v31 = vpop.f32.mrf.mxu0  ;;  %1908 = vmatmul.mubr.bf16.vlgmr.msra.gmra.mxu0 %v3417_v20  ;;  %v3233_v20 = vld [vmem:[#allocation5 + $0x174] ss:$8 sps:$4 sm:$0xff]  }
 0x11e   :  { %v3431_v32 = vpop.f32.mrf.mxu1  ;;  %1949 = vmatmul.mubr.bf16.vlgmr.msra.gmra.mxu1 %v3419_v21  ;;  %2362 = vmatpush1.bf16.msra.mxu0 %v3183_v29  ;;  %v3192_v21 = vld [vmem:[#allocation5 + $0x40] ss:$8 sps:$4 sm:$0xff]  }
 0x11f   :  { %v3435_v34 = vpop.f32.mrf.mxu0  ;;  %2363 = vmatprep.subr.bf16.mxu0 %v3188_v30  ;;  %2402 = vmatprep.subr.bf16.mxu1 %v3233_v20  ;;  %v327_v29 = vld [vmem:[%s3476_s2] sm:$0xf]  ;;  %v3448_v30 = vsub.s32 1, %v3439_v23 }
 0x120   :  { %v3437_v35 = vpop.f32.mrf.mxu1  ;;  %2403 = vmatpush1.bf16.msra.mxu1 %v3231_v41  ;;  %v3272_v41 = vld [vmem:[#allocation5 + $0x1a4] ss:$8 sps:$4 sm:$0xff]  }
 0x121   :  { %v1667_v38 = vpop.f32.mrf.mxu0  ;;  %2404 = vmatprep.subr.bf16.mxu1 %v3236_v42  ;;  %v3270_v42 = vld [vmem:[#allocation5 + $0x1a0] ss:$8 sps:$4 sm:$0xff]  }
 0x122   :  { %v1708_v39 = vpop.f32.mrf.mxu1  ;;  %2364 = vmatpush1.bf16.msra.mxu0 %v3186_v33  ;;  %v3225_v33 = vld [vmem:[#allocation5 + $0x90] ss:$8 sps:$4 sm:$0xff]   ;;  %v3230_v38 = vld [vmem:[#allocation5 + $0x84] ss:$8 sps:$4 sm:$0xff]  }
 0x123   :  { %v1668_v49 = vpop.f32.mrf.mxu0  ;;  %2365 = vmatprep.subr.bf16.mxu0 %v3191_v36  ;;  %v3267_v36 = vld [vmem:[#allocation5 + $0x1b0] ss:$8 sps:$4 sm:$0xff]   ;;  %v332_v39 = vrot.slane %v327_v29, %v3442_v28 }
 0x124   :  { %v1709_v9 = vpop.f32.mrf.mxu1  ;;  %2405 = vmatpush1.bf16.msra.mxu1 %v3234_v37  ;;  %v3228_v49 = vld [vmem:[#allocation5 + $0x80] ss:$8 sps:$4 sm:$0xff]  }
 0x125   :  { %2406 = vmatprep.subr.bf16.mxu1 %v3239_v43  ;;  %v1664_v9 = vadd.f32 %v3429_v31, %v332_v39  ;;  %v3273_v31 = vld [vmem:[#allocation5 + $0x190] ss:$8 sps:$4 sm:$0xff]  }
 0x126   :  { %2366 = vmatpush1.bf16.msra.mxu0 %v3189_v8  ;;  %v336_v8 = vrot.slane %v327_v29, %v3448_v30 }
 0x127   :  { %2367 = vmatprep.subr.bf16.mxu0 %v3194_v52  ;;  %v1705_v20 = vadd.f32 %v3431_v32, %v1664_v9  ;;  %v2029_v9 = vld [vmem:[%s3478_s4] sm:$0x3] }
 0x128   :  { %2407 = vmatpush1.bf16.msra.mxu1 %v3237_v45  ;;  %v1666_v52 = vadd.f32 %v3435_v34, %v336_v8 }
 0x129   :  { %2408 = vmatprep.subr.bf16.mxu1 %v3242_v47 }
 0x12a   :  { %2368 = vmatpush1.bf16.msra.mxu0 %v3192_v21 }
 0x12b   :  { %2369 = vmatprep.subr.bf16.mxu0 %v3197_v40  ;;  %v1707_v40 = vadd.f32 %v3437_v35, %v1666_v52  ;;  %v2034_v52 = vrot.slane %v2029_v9, %v3442_v28 }
 0x12c   :  { %2409 = vmatpush1.bf16.msra.mxu1 %v3240_v50 }
 0x12d   :  { %2410 = vmatprep.subr.bf16.mxu1 %v3245_v53 }
 0x12e   :  { %2370 = vmatpush1.bf16.msra.mxu0 %v3195_v44 }
 0x12f   :  { %2371 = vmatprep.subr.bf16.mxu0 %v3200_v46  ;;  %v3275_v46 = vld [vmem:[#allocation5 + $0x194] ss:$8 sps:$4 sm:$0xff]  }
 0x130   :  { %2411 = vmatpush1.bf16.msra.mxu1 %v3243_v55  ;;  %v3278_v55 = vld [vmem:[#allocation5 + $0x184] ss:$8 sps:$4 sm:$0xff]  }
 0x131   :  { %2412 = vmatprep.subr.bf16.mxu1 %v3248_v57  ;;  %v3276_v57 = vld [vmem:[#allocation5 + $0x180] ss:$8 sps:$4 sm:$0xff]  }
 0x132   :  { %2372 = vmatpush1.bf16.msra.mxu0 %v3198_v48 }
 0x133   :  { %2373 = vmatprep.subr.bf16.mxu0 %v3203_v51 }
 0x134   :  { %2413 = vmatpush1.bf16.msra.mxu1 %v3246_v59 }
 0x135   :  { %2414 = vmatprep.subr.bf16.mxu1 %v3251_v61 }
 0x136   :  { %2374 = vmatpush1.bf16.msra.mxu0 %v3201_v54 }
 0x137   :  { %2375 = vmatprep.subr.bf16.mxu0 %v3206_v56 }
 0x138   :  { %2415 = vmatpush1.bf16.msra.mxu1 %v3249_v63 }
 0x139   :  { %2416 = vmatprep.subr.bf16.mxu1 %v3254_v1 }
 0x13a   :  { %2376 = vmatpush1.bf16.msra.mxu0 %v3204_v58 }
 0x13b   :  { %2377 = vmatprep.subr.bf16.mxu0 %v3209_v60 }
 0x13c   :  { %2417 = vmatpush1.bf16.msra.mxu1 %v3252_v3  ;;  %v339_v3 = vsub.s32 2, %v3439_v23 }
 0x13d   :  { %2418 = vmatprep.subr.bf16.mxu1 %v3257_v5 }
 0x13e   :  { %2378 = vmatpush2.bf16.msra.mxu0 %v3207_v62  ;;  %v340_v5 = vrot.slane %v327_v29, %v339_v3 }
 0x13f   :  { %2379 = vmatprep.subr.bf16.mxu0 %v3212_v0 }
 0x140   :  { %2419 = vmatpush2.bf16.msra.mxu1 %v3255_v7 }
 0x141   :  { %2420 = vmatprep.subr.bf16.mxu1 %v3260_v11 }
 0x142   :  { %2380 = vmatpush2.bf16.msra.mxu0 %v3210_v2 }
 0x143   :  { %2381 = vmatprep.subr.bf16.mxu0 %v3215_v4  ;;  %v343_v4 = vsub.s32 3, %v3439_v23 }
 0x144   :  { %2421 = vmatpush2.bf16.msra.mxu1 %v3258_v13 }
 0x145   :  { %2422 = vmatprep.subr.bf16.mxu1 %v3263_v15 }
 0x146   :  { %2382 = vmatpush2.bf16.msra.mxu0 %v3213_v6  ;;  %v344_v6 = vrot.slane %v327_v29, %v343_v4 }
 0x147   :  { %2383 = vmatprep.subr.bf16.mxu0 %v3218_v10 }
 0x148   :  { %2423 = vmatpush2.bf16.msra.mxu1 %v3261_v18 }
 0x149   :  { %2424 = vmatprep.subr.bf16.mxu1 %v3266_v22 }
 0x14a   :  { %2384 = vmatpush2.bf16.msra.mxu0 %v3216_v12 }
 0x14b   :  { %2385 = vmatprep.subr.bf16.mxu0 %v3221_v14 }
 0x14c   :  { %2425 = vmatpush2.bf16.msra.mxu1 %v3264_v25 }
 0x14d   :  { %2426 = vmatprep.subr.bf16.mxu1 %v3269_v27 }
 0x14e   :  { %2386 = vmatpush2.bf16.msra.mxu0 %v3219_v17 }
 0x14f   :  { %2387 = vmatprep.subr.bf16.mxu0 %v3224_v19 }
 0x150   :  { %2427 = vmatpush2.bf16.msra.mxu1 %v3267_v36 }
 0x151   :  { %2428 = vmatprep.subr.bf16.mxu1 %v3272_v41  ;;  %v2038_v41 = vrot.slane %v2029_v9, %v3448_v30 }
 0x152   :  { %2388 = vmatpush2.bf16.msra.mxu0 %v3222_v24 }
 0x153   :  { %2389 = vmatprep.subr.bf16.mxu0 %v3227_v26 }
 0x154   :  { %2429 = vmatpush2.bf16.msra.mxu1 %v3270_v42 }
 0x155   :  { %2430 = vmatprep.subr.bf16.mxu1 %v3275_v46 }
 0x156   :  { %2390 = vmatpush2.bf16.msra.mxu0 %v3225_v33 }
 0x157   :  { %2391 = vmatprep.subr.bf16.mxu0 %v3230_v38 }
 0x158   :  { %2431 = vmatpush2.bf16.msra.mxu1 %v3273_v31 }
 0x159   :  { %2432 = vmatprep.subr.bf16.mxu1 %v3278_v55 }
 0x15a   :  { %2392 = vmatpush2.bf16.msra.mxu0 %v3228_v49 }
 0x15c   :  { %2433 = vmatpush2.bf16.msra.mxu1 %v3276_v57 }
 0x15d   :  { %v1745_v21 = vpop.f32.mrf.mxu0 }
 0x15e   :  { %v1786_v37 = vpop.f32.mrf.mxu1  ;;  %v1746_v43 = vadd.f32 %v1745_v21, %v1705_v20  ;;  %v2445_v21 = vld [vmem:[%s3479_s5] sm:$0x3] }
 0x15f   :  { %v1747_v44 = vpop.f32.mrf.mxu0  ;;  %v2450_v46 = vrot.slane %v2445_v21, %v3442_v28 }
 0x160   :  { %v1788_v45 = vpop.f32.mrf.mxu1  ;;  %v1787_v47 = vadd.f32 %v1786_v37, %v1746_v43  ;;  %v1748_v48 = vadd.f32 %v1747_v44, %v1707_v40 }
 0x161   :  { %v1749_v50 = vpop.f32.mrf.mxu0 }
 0x162   :  { %v1790_v34 = vpop.f32.mrf.mxu1  ;;  %v1789_v51 = vadd.f32 %v1788_v45, %v1748_v48  ;;  %v1957_v32 = vmax.f32 %v1787_v47, 0.0  ;;  %v2454_v47 = vrot.slane %v2445_v21, %v3448_v30 }
 0x163   :  { %v1750_v53 = vpop.f32.mrf.mxu0 }
 0x164   :  { %v1791_v54 = vpop.f32.mrf.mxu1  ;;  %v1958_v56 = vmax.f32 %v1789_v51, 0.0  ;;  %v1961_v58 = vpack.c.bf16 %v1957_v32, %v1957_v32  ;;  %v2463_v53 = vstv %s3480_s6 }
 0x166   :  { %v1962_v35 = vpack.c.bf16 %v1958_v56, %v1958_v56 }
 0x168   :  { %2393 = vmatprep.mubr.bf16.mxu0 %v1962_v35 }
 0x169   :  { %2394 = vmatmul.mubr.bf16.vlgmr.msra.gmra.mxu0 %v1961_v58 }
 0x19d   :  { %v1827_v59 = vpop.f32.mrf.mxu0 }
 0x19e   :  { %v1868_v60 = vpop.f32.mrf.mxu1  ;;  %v1828_v7 = vadd.f32 %v1827_v59, %v340_v5 }
 0x19f   :  { %v1829_v61 = vpop.f32.mrf.mxu0 }
 0x1a0   :  { %v1870_v62 = vpop.f32.mrf.mxu1  ;;  %v1830_v10 = vadd.f32 %v1829_v61, %v344_v6  ;;  %v1869_v11 = vadd.f32 %v1868_v60, %v1828_v7 }
 0x1a1   :  { %v1831_v63 = vpop.f32.mrf.mxu0 }
 0x1a2   :  { %v1872_v0 = vpop.f32.mrf.mxu1  ;;  %v1871_v14 = vadd.f32 %v1870_v62, %v1830_v10 }
 0x1a3   :  { %v1832_v1 = vpop.f32.mrf.mxu0 }
 0x1a4   :  { %v1873_v2 = vpop.f32.mrf.mxu1 }
 0x1dd   :  { %v1909_v12 = vpop.f32.mrf.mxu0 }
 0x1de   :  { %v1950_v13 = vpop.f32.mrf.mxu1  ;;  %v1910_v15 = vadd.f32 %v1909_v12, %v1869_v11 }
 0x1df   :  { %v1911_v16 = vpop.f32.mrf.mxu0 }
 0x1e0   :  { %v1952_v17 = vpop.f32.mrf.mxu1  ;;  %v1951_v18 = vadd.f32 %v1950_v13, %v1910_v15  ;;  %v1912_v19 = vadd.f32 %v1911_v16, %v1871_v14 }
 0x1e1   :  { %v1913_v22 = vpop.f32.mrf.mxu0 }
 0x1e2   :  { %v1954_v24 = vpop.f32.mrf.mxu1  ;;  %v1953_v25 = vadd.f32 %v1952_v17, %v1912_v19  ;;  %v1959_v26 = vmax.f32 %v1951_v18, 0.0 }
 0x1e3   :  { %v1914_v27 = vpop.f32.mrf.mxu0 }
 0x1e4   :  { %v1955_v33 = vpop.f32.mrf.mxu1  ;;  %v1960_v23 = vmax.f32 %v1953_v25, 0.0  ;;  %v1963_v29 = vpack.c.bf16 %v1959_v26, %v1959_v26 }
 0x1e6   :  { %v1964_v36 = vpack.c.bf16 %v1960_v23, %v1960_v23 }
 0x1e8   :  { %2434 = vmatprep.mubr.bf16.mxu1 %v1964_v36 }
 0x1e9   :  { %2435 = vmatmul.mubr.bf16.vlgmr.msra.gmra.mxu1 %v1963_v29 }
 0x229   :  { %v2395_v38 = vpop.f32.mrf.mxu0 }
 0x22a   :  { %v2396_v20 = vadd.f32 %v2395_v38, %v2034_v52 }
 0x22b   :  { %v2397_v39 = vpop.f32.mrf.mxu0 }
 0x22c   :  { %v2398_v37 = vadd.f32 %v2397_v39, %v2038_v41 }
 0x22d   :  { %v2399_v8 = vpop.f32.mrf.mxu0 }
 0x22f   :  { %v2400_v49 = vpop.f32.mrf.mxu0 }
 0x2a9   :  { %v2436_v42 = vpop.f32.mrf.mxu1 }
 0x2aa   :  { %v2437_v40 = vadd.f32 %v2436_v42, %v2396_v20 }
 0x2ab   :  { %v2438_v43 = vpop.f32.mrf.mxu1 }
 0x2ac   :  { %v2443_v44 = vmax.f32 %v2437_v40, 0.0  ;;  %v2439_v45 = vadd.f32 %v2438_v43, %v2398_v37 }
 0x2ad   :  { %v2440_v48 = vpop.f32.mrf.mxu1 }
 0x2ae   :  { %v2444_v31 = vmax.f32 %v2439_v45, 0.0  ;;  %v2457_v34 = vmul.f32 %v2450_v46, %v2443_v44 }
 0x2af   :  { %v2441_v50 = vpop.f32.mrf.mxu1 }
 0x2b0   :  { %v2458_v51 = vmul.f32 %v2454_v47, %v2444_v31 }
 0x2b2   :  { %v2459_v32 = vadd.f32 %v2458_v51, %v2457_v34 }
 0x2b4   :  { %2460 = vadd.xlane.f32.xlu0 %v2459_v32 }
 0x33d   :  { %v2461_v54 = vpop.xlane.xlu0 %2460 }
 0x33e   :  { %v2464_v55 = vadd.f32 %v2463_v53, %v2461_v54 }
 0x340   :  { %2466 = vst.msk [vmem:[%s3481_s7] sm:$0xff] %vm2465_vm0, %v2464_v55 }
 0x341   :  { %2471 = vsyncpa [#allocation4], 1 }
 0x342   :  { %2472 = vsyncpa [#allocation6], 1 }

</bundles_post_ra>
